<compile_context>
chip_gen: v7x
topology: tpu7x:2x2x1
jax: 0.10.0
libtpu: 0.0.40
codegen_flags: <defaults>
</compile_context>

<pallas_src>
import jax
import jax.numpy as jnp
import numpy as np
from jax.experimental import pallas as pl
from jax.experimental.pallas import tpu as pltpu

# ---------------- model hyper-params (small, consistent with the module) ----
NUM_DATES = 8
NUM_TIMES = 6
NUM_LOCATIONS = 16
MAX_TIMEDELTA = 10
EMB = 32            # emb_dim
NHEAD = 4
HEAD_DIM = EMB // NHEAD
FFN = 64            # dim_feedforward
NUM_LAYERS = 2
BATCH = 2
SEQ = 8
EPS = 1e-5          # nn.LayerNorm default eps


# ------------------------------ kernel helpers -------------------------------
def _layer_norm(x, gamma, beta):
    """LayerNorm over the last (lane) axis. gamma/beta are (1, D) and broadcast."""
    mu = jnp.mean(x, axis=-1, keepdims=True)
    var = jnp.mean((x - mu) ** 2, axis=-1, keepdims=True)
    return (x - mu) * jax.lax.rsqrt(var + EPS) * gamma + beta


def _split_heads(qkv, base):
    """Slice the fused QKV activations (S, 3D) into a head-batched (H, S, hd)
    block starting at lane offset `base` (0 for Q, D for K, 2D for V)."""
    return jnp.stack(
        [qkv[:, base + h * HEAD_DIM: base + (h + 1) * HEAD_DIM]
         for h in range(NHEAD)], axis=0)


# ------------------------------ fused kernel ---------------------------------
def lpbert_fused_kernel(x_ref, pad_ref,
                        in_w_ref, in_b_ref, out_w_ref, out_b_ref,
                        ln1_g_ref, ln1_b_ref,
                        w1_ref, b1_ref, w2_ref, b2_ref,
                        ln2_g_ref, ln2_b_ref,
                        cls_w_ref, cls_b_ref,
                        o_ref):
    """Full LP-BERT forward for ONE batch element (grid iterates over batch):
    NUM_LAYERS post-LN TransformerEncoderLayers (ReLU FFN) + linear classifier.
    All weights follow the PyTorch (out_features, in_features) convention."""
    S, D, H, hd = SEQ, EMB, NHEAD, HEAD_DIM

    x = x_ref[0]                                    # (S, D) f32 residual stream
    # key padding bias, hoisted out of the layer loop:
    # pad == 1.0 for valid tokens, 0.0 for padding -> additive -1e9 over keys
    neg = (1.0 - pad_ref[...]) * (-1e9)             # (1, 1, S)
    scale = float(hd) ** -0.5

    for l in range(NUM_LAYERS):                     # static unroll (NUM_LAYERS = 2)
        # ---------------- self-attention ----------------
        # fused QKV projection: single (S,D) @ (D,3D) MXU matmul
        qkv = jnp.einsum('sd,ed->se', x, in_w_ref[l],
                         preferred_element_type=jnp.float32) + in_b_ref[l]   # (S, 3D)
        q = _split_heads(qkv, 0 * D)                # (H, S, hd)
        k = _split_heads(qkv, 1 * D)                # (H, S, hd)
        v = _split_heads(qkv, 2 * D)                # (H, S, hd)

        # head-batched scores + masked softmax
        sc = jnp.einsum('hqd,hkd->hqk', q, k,
                        preferred_element_type=jnp.float32) * scale + neg   # (H,S,S)
        sc = sc - jnp.max(sc, axis=-1, keepdims=True)
        p = jnp.exp(sc)
        p = p * pl.reciprocal(jnp.sum(p, axis=-1, keepdims=True), approx=True)

        ctx = jnp.einsum('hqk,hkd->hqd', p, v,
                         preferred_element_type=jnp.float32)                # (H,S,hd)
        attn = jnp.concatenate([ctx[h] for h in range(H)], axis=-1)         # (S, D)
        attn = jnp.einsum('sd,ed->se', attn, out_w_ref[l],
                          preferred_element_type=jnp.float32) + out_b_ref[l]

        x = _layer_norm(x + attn, ln1_g_ref[l], ln1_b_ref[l])

        # ---------------- feed-forward (ReLU) ----------------
        h1 = jnp.einsum('sd,fd->sf', x, w1_ref[l],
                        preferred_element_type=jnp.float32) + b1_ref[l]     # (S, FFN)
        h1 = jnp.maximum(h1, 0.0)
        h2 = jnp.einsum('sf,df->sd', h1, w2_ref[l],
                        preferred_element_type=jnp.float32) + b2_ref[l]     # (S, D)

        x = _layer_norm(x + h2, ln2_g_ref[l], ln2_b_ref[l])

    # ---------------- classifier ----------------
    logits = jnp.einsum('sd,ld->sl', x, cls_w_ref[...],
                        preferred_element_type=jnp.float32) + cls_b_ref[...]
    o_ref[0] = logits


# ------------------------------ parameters -----------------------------------
def init_params(key):
    keys = iter(jax.random.split(key, 64))

    def nrm(shape, scale=0.02):
        return jax.random.normal(next(keys), shape, jnp.float32) * scale

    params = {
        'date_emb': nrm((NUM_DATES, EMB)),
        'time_emb': nrm((NUM_TIMES, EMB)),
        'loc_emb': nrm((NUM_LOCATIONS + 1, EMB)),     # +1 for mask token
        'delta_emb': nrm((MAX_TIMEDELTA + 1, EMB)),
        'cls_w': nrm((NUM_LOCATIONS, EMB)),
        'cls_b': nrm((1, NUM_LOCATIONS)),
        'layers': [],
    }
    for _ in range(NUM_LAYERS):
        params['layers'].append({
            'in_w': nrm((3 * EMB, EMB)),
            'in_b': nrm((1, 3 * EMB)),
            'out_w': nrm((EMB, EMB)),
            'out_b': nrm((1, EMB)),
            'ln1_g': jnp.ones((1, EMB), jnp.float32),
            'ln1_b': jnp.zeros((1, EMB), jnp.float32),
            'w1': nrm((FFN, EMB)),
            'b1': nrm((1, FFN)),
            'w2': nrm((EMB, FFN)),
            'b2': nrm((1, EMB)),
            'ln2_g': jnp.ones((1, EMB), jnp.float32),
            'ln2_b': jnp.zeros((1, EMB), jnp.float32),
        })
    return params


def _rep_spec(shape):
    """Full-array block, replicated across the batch grid (same block each step)."""
    nd = len(shape)
    return pl.BlockSpec(shape, lambda b: (0,) * nd)


# ------------------------------ forward ---------------------------------------
@jax.jit
def lp_bert_forward(params, date_idx, time_idx, loc_idx, delta_idx, padding_mask):
    # clamp indices exactly like the PyTorch module
    date_idx = jnp.clip(date_idx, 0, NUM_DATES - 1)
    time_idx = jnp.clip(time_idx, 0, NUM_TIMES - 1)
    loc_idx = jnp.clip(loc_idx, 0, NUM_LOCATIONS)            # mask token allowed
    delta_idx = jnp.clip(delta_idx, 0, MAX_TIMEDELTA)

    # embedding lookups + sum (data-dependent gathers: plain JAX glue)
    x = (params['date_emb'][date_idx]
         + params['time_emb'][time_idx]
         + params['loc_emb'][loc_idx]
         + params['delta_emb'][delta_idx]).astype(jnp.float32)   # (B, S, D)

    # NOTE: padding_mask True == VALID token (PyTorch uses ~padding_mask = is-pad)
    pad = padding_mask.astype(jnp.float32).reshape(BATCH, 1, SEQ)

    layers = params['layers']
    stacked = {k: jnp.stack([lyr[k] for lyr in layers], axis=0)
               for k in layers[0]}

    weight_args = [
        stacked['in_w'], stacked['in_b'], stacked['out_w'], stacked['out_b'],
        stacked['ln1_g'], stacked['ln1_b'],
        stacked['w1'], stacked['b1'], stacked['w2'], stacked['b2'],
        stacked['ln2_g'], stacked['ln2_b'],
        params['cls_w'], params['cls_b'],
    ]

    in_specs = ([pl.BlockSpec((1, SEQ, EMB), lambda b: (b, 0, 0)),
                 pl.BlockSpec((1, 1, SEQ), lambda b: (b, 0, 0))]
                + [_rep_spec(w.shape) for w in weight_args])

    logits = pl.pallas_call(
        lpbert_fused_kernel,
        out_shape=jax.ShapeDtypeStruct((BATCH, SEQ, NUM_LOCATIONS), jnp.float32),
        grid=(BATCH,),
        in_specs=in_specs,
        out_specs=pl.BlockSpec((1, SEQ, NUM_LOCATIONS), lambda b: (b, 0, 0)),
        compiler_params=pltpu.CompilerParams(
            dimension_semantics=("parallel",)),      # 2 TCs on v7x; no-op on v5e/v6e
    )(x, pad, *weight_args)
    return logits


# ------------------------------ main ------------------------------------------
if __name__ == "__main__":
    key = jax.random.PRNGKey(0)
    kp, k1, k2, k3, k4 = jax.random.split(key, 5)

    params = init_params(kp)

    date_idx = jax.random.randint(k1, (BATCH, SEQ), 0, NUM_DATES, jnp.int32)
    time_idx = jax.random.randint(k2, (BATCH, SEQ), 0, NUM_TIMES, jnp.int32)
    loc_idx = jax.random.randint(k3, (BATCH, SEQ), 0, NUM_LOCATIONS + 1, jnp.int32)
    delta_idx = jax.random.randint(k4, (BATCH, SEQ), 0, MAX_TIMEDELTA + 1, jnp.int32)

    padding_mask = np.ones((BATCH, SEQ), dtype=bool)     # True = valid token
    padding_mask[1, -2:] = False                         # some padding in batch 1
    padding_mask = jnp.asarray(padding_mask)

    token_mask = np.zeros((BATCH, SEQ), dtype=bool)
    token_mask[0, 3] = True
    token_mask[1, 1] = True

    logits = lp_bert_forward(params, date_idx, time_idx, loc_idx,
                             delta_idx, padding_mask)
    logits = jax.block_until_ready(logits)
    assert logits.shape == (BATCH, SEQ, NUM_LOCATIONS)

    # token_mask gather (data-dependent output size) is done host-side, like
    # the PyTorch `logits[batch_idx, seq_idx, :]` path.
    # TODO(synk): the variable-size masked-token selection has no static-shape
    # Pallas equivalent; kept outside the kernel.
    b_idx, s_idx = np.nonzero(token_mask)
    logits_masked = jax.block_until_ready(
        logits[jnp.asarray(b_idx), jnp.asarray(s_idx), :])
    assert logits_masked.shape == (len(b_idx), NUM_LOCATIONS)
    assert bool(jnp.all(jnp.isfinite(logits))) and bool(jnp.all(jnp.isfinite(logits_masked)))

    print("KERNEL_OK")
</pallas_src>

<mosaic_0001>
module attributes {stable_mosaic.version = 11 : i64} {
  func.func @lpbert_fused_kernel(%arg0: i32, %arg1: memref<1x8x32xf32, #tpu.memory_space<vmem>>, %arg2: memref<1x1x8xf32, #tpu.memory_space<vmem>>, %arg3: memref<2x96x32xf32, #tpu.memory_space<vmem>>, %arg4: memref<2x1x96xf32, #tpu.memory_space<vmem>>, %arg5: memref<2x32x32xf32, #tpu.memory_space<vmem>>, %arg6: memref<2x1x32xf32, #tpu.memory_space<vmem>>, %arg7: memref<2x1x32xf32, #tpu.memory_space<vmem>>, %arg8: memref<2x1x32xf32, #tpu.memory_space<vmem>>, %arg9: memref<2x64x32xf32, #tpu.memory_space<vmem>>, %arg10: memref<2x1x64xf32, #tpu.memory_space<vmem>>, %arg11: memref<2x32x64xf32, #tpu.memory_space<vmem>>, %arg12: memref<2x1x32xf32, #tpu.memory_space<vmem>>, %arg13: memref<2x1x32xf32, #tpu.memory_space<vmem>>, %arg14: memref<2x1x32xf32, #tpu.memory_space<vmem>>, %arg15: memref<16x32xf32, #tpu.memory_space<vmem>>, %arg16: memref<1x16xf32, #tpu.memory_space<vmem>>, %arg17: memref<1x8x16xf32, #tpu.memory_space<vmem>>) attributes {dimension_semantics = [#tpu.dimension_semantics<parallel>], iteration_bounds = array<i64: 2>, scalar_prefetch = 0 : i64, scratch_operands = 0 : i64, tpu.core_type = #tpu.core_type<tc>, window_params = [{transform_indices = @transform_0, window_bounds = array<i64: 1, 8, 32>}, {transform_indices = @transform_1, window_bounds = array<i64: 1, 1, 8>}, {pipeline_mode = #tpu.pipeline_mode<synchronous>, transform_indices = @transform_2, window_bounds = array<i64: 2, 96, 32>}, {pipeline_mode = #tpu.pipeline_mode<synchronous>, transform_indices = @transform_3, window_bounds = array<i64: 2, 1, 96>}, {pipeline_mode = #tpu.pipeline_mode<synchronous>, transform_indices = @transform_4, window_bounds = array<i64: 2, 32, 32>}, {pipeline_mode = #tpu.pipeline_mode<synchronous>, transform_indices = @transform_5, window_bounds = array<i64: 2, 1, 32>}, {pipeline_mode = #tpu.pipeline_mode<synchronous>, transform_indices = @transform_6, window_bounds = array<i64: 2, 1, 32>}, {pipeline_mode = #tpu.pipeline_mode<synchronous>, transform_indices = @transform_7, window_bounds = array<i64: 2, 1, 32>}, {pipeline_mode = #tpu.pipeline_mode<synchronous>, transform_indices = @transform_8, window_bounds = array<i64: 2, 64, 32>}, {pipeline_mode = #tpu.pipeline_mode<synchronous>, transform_indices = @transform_9, window_bounds = array<i64: 2, 1, 64>}, {pipeline_mode = #tpu.pipeline_mode<synchronous>, transform_indices = @transform_10, window_bounds = array<i64: 2, 32, 64>}, {pipeline_mode = #tpu.pipeline_mode<synchronous>, transform_indices = @transform_11, window_bounds = array<i64: 2, 1, 32>}, {pipeline_mode = #tpu.pipeline_mode<synchronous>, transform_indices = @transform_12, window_bounds = array<i64: 2, 1, 32>}, {pipeline_mode = #tpu.pipeline_mode<synchronous>, transform_indices = @transform_13, window_bounds = array<i64: 2, 1, 32>}, {pipeline_mode = #tpu.pipeline_mode<synchronous>, transform_indices = @transform_14, window_bounds = array<i64: 16, 32>}, {pipeline_mode = #tpu.pipeline_mode<synchronous>, transform_indices = @transform_15, window_bounds = array<i64: 1, 16>}, {transform_indices = @transform_16, window_bounds = array<i64: 1, 8, 16>}]} {
    %c0 = arith.constant 0 : index
    %c0_0 = arith.constant 0 : index
    %c0_1 = arith.constant 0 : index
    %0 = vector.load %arg1[%c0, %c0_0, %c0_1] : memref<1x8x32xf32, #tpu.memory_space<vmem>>, vector<1x8x32xf32>
    %1 = vector.shape_cast %0 : vector<1x8x32xf32> to vector<8x32xf32>
    %c0_2 = arith.constant 0 : index
    %c0_3 = arith.constant 0 : index
    %c0_4 = arith.constant 0 : index
    %2 = vector.load %arg2[%c0_2, %c0_3, %c0_4] : memref<1x1x8xf32, #tpu.memory_space<vmem>>, vector<1x1x8xf32>
    %cst = arith.constant 1.000000e+00 : f32
    %3 = vector.broadcast %cst : f32 to vector<1x1x8xf32>
    %4 = arith.subf %3, %2 : vector<1x1x8xf32>
    %cst_5 = arith.constant -1.000000e+09 : f32
    %5 = vector.broadcast %cst_5 : f32 to vector<1x1x8xf32>
    %6 = arith.mulf %4, %5 : vector<1x1x8xf32>
    %c0_6 = arith.constant 0 : index
    %c0_7 = arith.constant 0 : index
    %c0_8 = arith.constant 0 : index
    %7 = vector.load %arg3[%c0_6, %c0_7, %c0_8] : memref<2x96x32xf32, #tpu.memory_space<vmem>>, vector<1x96x32xf32>
    %8 = vector.shape_cast %7 : vector<1x96x32xf32> to vector<96x32xf32>
    "tpu.trace_start"() <{level = 10 : i32, message = "sd,ed->se"}> : () -> ()
    %cst_9 = arith.constant dense<0.000000e+00> : vector<8x96xf32>
    %9 = tpu.matmul %1, %8, %cst_9 {dimension_numbers = #tpu.dot_dimension_numbers<[1], [1], [0], [0], [0, 0, 1, 0], [], []>} : vector<8x32xf32>, vector<96x32xf32>, vector<8x96xf32> -> vector<8x96xf32>
    "tpu.trace_stop"() : () -> ()
    %c0_10 = arith.constant 0 : index
    %c0_11 = arith.constant 0 : index
    %c0_12 = arith.constant 0 : index
    %10 = vector.load %arg4[%c0_10, %c0_11, %c0_12] : memref<2x1x96xf32, #tpu.memory_space<vmem>>, vector<1x1x96xf32>
    %11 = vector.shape_cast %10 : vector<1x1x96xf32> to vector<1x96xf32>
    %12 = vector.broadcast %11 : vector<1x96xf32> to vector<8x96xf32>
    %13 = arith.addf %9, %12 : vector<8x96xf32>
    %14 = vector.extract_strided_slice %13 {offsets = [0, 0], sizes = [8, 8], strides = [1, 1]} : vector<8x96xf32> to vector<8x8xf32>
    %15 = vector.extract_strided_slice %13 {offsets = [0, 8], sizes = [8, 8], strides = [1, 1]} : vector<8x96xf32> to vector<8x8xf32>
    %16 = vector.extract_strided_slice %13 {offsets = [0, 16], sizes = [8, 8], strides = [1, 1]} : vector<8x96xf32> to vector<8x8xf32>
    %17 = vector.extract_strided_slice %13 {offsets = [0, 24], sizes = [8, 8], strides = [1, 1]} : vector<8x96xf32> to vector<8x8xf32>
    %18 = vector.shape_cast %14 : vector<8x8xf32> to vector<1x8x8xf32>
    %19 = vector.shape_cast %15 : vector<8x8xf32> to vector<1x8x8xf32>
    %20 = vector.shape_cast %16 : vector<8x8xf32> to vector<1x8x8xf32>
    %21 = vector.shape_cast %17 : vector<8x8xf32> to vector<1x8x8xf32>
    %22 = tpu.concatenate %18, %19, %20, %21 in 0 : vector<1x8x8xf32>, vector<1x8x8xf32>, vector<1x8x8xf32>, vector<1x8x8xf32> -> vector<4x8x8xf32>
    %23 = vector.extract_strided_slice %13 {offsets = [0, 32], sizes = [8, 8], strides = [1, 1]} : vector<8x96xf32> to vector<8x8xf32>
    %24 = vector.extract_strided_slice %13 {offsets = [0, 40], sizes = [8, 8], strides = [1, 1]} : vector<8x96xf32> to vector<8x8xf32>
    %25 = vector.extract_strided_slice %13 {offsets = [0, 48], sizes = [8, 8], strides = [1, 1]} : vector<8x96xf32> to vector<8x8xf32>
    %26 = vector.extract_strided_slice %13 {offsets = [0, 56], sizes = [8, 8], strides = [1, 1]} : vector<8x96xf32> to vector<8x8xf32>
    %27 = vector.shape_cast %23 : vector<8x8xf32> to vector<1x8x8xf32>
    %28 = vector.shape_cast %24 : vector<8x8xf32> to vector<1x8x8xf32>
    %29 = vector.shape_cast %25 : vector<8x8xf32> to vector<1x8x8xf32>
    %30 = vector.shape_cast %26 : vector<8x8xf32> to vector<1x8x8xf32>
    %31 = tpu.concatenate %27, %28, %29, %30 in 0 : vector<1x8x8xf32>, vector<1x8x8xf32>, vector<1x8x8xf32>, vector<1x8x8xf32> -> vector<4x8x8xf32>
    %32 = vector.extract_strided_slice %13 {offsets = [0, 64], sizes = [8, 8], strides = [1, 1]} : vector<8x96xf32> to vector<8x8xf32>
    %33 = vector.extract_strided_slice %13 {offsets = [0, 72], sizes = [8, 8], strides = [1, 1]} : vector<8x96xf32> to vector<8x8xf32>
    %34 = vector.extract_strided_slice %13 {offsets = [0, 80], sizes = [8, 8], strides = [1, 1]} : vector<8x96xf32> to vector<8x8xf32>
    %35 = vector.extract_strided_slice %13 {offsets = [0, 88], sizes = [8, 8], strides = [1, 1]} : vector<8x96xf32> to vector<8x8xf32>
    %36 = vector.shape_cast %32 : vector<8x8xf32> to vector<1x8x8xf32>
    %37 = vector.shape_cast %33 : vector<8x8xf32> to vector<1x8x8xf32>
    %38 = vector.shape_cast %34 : vector<8x8xf32> to vector<1x8x8xf32>
    %39 = vector.shape_cast %35 : vector<8x8xf32> to vector<1x8x8xf32>
    %40 = tpu.concatenate %36, %37, %38, %39 in 0 : vector<1x8x8xf32>, vector<1x8x8xf32>, vector<1x8x8xf32>, vector<1x8x8xf32> -> vector<4x8x8xf32>
    "tpu.trace_start"() <{level = 10 : i32, message = "hqd,hkd->hqk"}> : () -> ()
    %cst_13 = arith.constant dense<0.000000e+00> : vector<4x8x8xf32>
    %41 = tpu.matmul %22, %31, %cst_13 {dimension_numbers = #tpu.dot_dimension_numbers<[2], [2], [1], [1], [0, 0, 0, 1, 1, 1], [0], [0]>} : vector<4x8x8xf32>, vector<4x8x8xf32>, vector<4x8x8xf32> -> vector<4x8x8xf32>
    "tpu.trace_stop"() : () -> ()
    %cst_14 = arith.constant 0.353553385 : f32
    %42 = vector.broadcast %cst_14 : f32 to vector<4x8x8xf32>
    %43 = arith.mulf %41, %42 : vector<4x8x8xf32>
    %44 = vector.broadcast %6 : vector<1x1x8xf32> to vector<4x8x8xf32>
    %45 = arith.addf %43, %44 : vector<4x8x8xf32>
    %cst_15 = arith.constant dense<0xFF800000> : vector<4x8xf32>
    %46 = vector.multi_reduction <maximumf>, %45, %cst_15 [2] : vector<4x8x8xf32> to vector<4x8xf32>
    %47 = vector.shape_cast %46 : vector<4x8xf32> to vector<4x8x1xf32>
    %48 = vector.broadcast %47 : vector<4x8x1xf32> to vector<4x8x8xf32>
    %49 = arith.subf %45, %48 : vector<4x8x8xf32>
    %50 = math.exp %49 : vector<4x8x8xf32>
    %cst_16 = arith.constant dense<0.000000e+00> : vector<4x8xf32>
    %51 = vector.multi_reduction <add>, %50, %cst_16 [2] : vector<4x8x8xf32> to vector<4x8xf32>
    %52 = vector.shape_cast %51 : vector<4x8xf32> to vector<4x8x1xf32>
    %53 = tpu.reciprocal %52 {approx = true} : vector<4x8x1xf32> -> vector<4x8x1xf32>
    %54 = vector.broadcast %53 : vector<4x8x1xf32> to vector<4x8x8xf32>
    %55 = arith.mulf %50, %54 : vector<4x8x8xf32>
    "tpu.trace_start"() <{level = 10 : i32, message = "hqk,hkd->hqd"}> : () -> ()
    %cst_17 = arith.constant dense<0.000000e+00> : vector<4x8x8xf32>
    %56 = tpu.matmul %55, %40, %cst_17 {dimension_numbers = #tpu.dot_dimension_numbers<[2], [1], [1], [2], [0, 0, 0, 1, 1, 2], [0], [0]>} : vector<4x8x8xf32>, vector<4x8x8xf32>, vector<4x8x8xf32> -> vector<4x8x8xf32>
    "tpu.trace_stop"() : () -> ()
    %57 = vector.extract_strided_slice %56 {offsets = [0, 0, 0], sizes = [1, 8, 8], strides = [1, 1, 1]} : vector<4x8x8xf32> to vector<1x8x8xf32>
    %58 = vector.shape_cast %57 : vector<1x8x8xf32> to vector<8x8xf32>
    %59 = vector.extract_strided_slice %56 {offsets = [1, 0, 0], sizes = [1, 8, 8], strides = [1, 1, 1]} : vector<4x8x8xf32> to vector<1x8x8xf32>
    %60 = vector.shape_cast %59 : vector<1x8x8xf32> to vector<8x8xf32>
    %61 = vector.extract_strided_slice %56 {offsets = [2, 0, 0], sizes = [1, 8, 8], strides = [1, 1, 1]} : vector<4x8x8xf32> to vector<1x8x8xf32>
    %62 = vector.shape_cast %61 : vector<1x8x8xf32> to vector<8x8xf32>
    %63 = vector.extract_strided_slice %56 {offsets = [3, 0, 0], sizes = [1, 8, 8], strides = [1, 1, 1]} : vector<4x8x8xf32> to vector<1x8x8xf32>
    %64 = vector.shape_cast %63 : vector<1x8x8xf32> to vector<8x8xf32>
    %65 = tpu.concatenate %58, %60, %62, %64 in 1 : vector<8x8xf32>, vector<8x8xf32>, vector<8x8xf32>, vector<8x8xf32> -> vector<8x32xf32>
    %c0_18 = arith.constant 0 : index
    %c0_19 = arith.constant 0 : index
    %c0_20 = arith.constant 0 : index
    %66 = vector.load %arg5[%c0_18, %c0_19, %c0_20] : memref<2x32x32xf32, #tpu.memory_space<vmem>>, vector<1x32x32xf32>
    %67 = vector.shape_cast %66 : vector<1x32x32xf32> to vector<32x32xf32>
    "tpu.trace_start"() <{level = 10 : i32, message = "sd,ed->se"}> : () -> ()
    %cst_21 = arith.constant dense<0.000000e+00> : vector<8x32xf32>
    %68 = tpu.matmul %65, %67, %cst_21 {dimension_numbers = #tpu.dot_dimension_numbers<[1], [1], [0], [0], [0, 0, 1, 0], [], []>} : vector<8x32xf32>, vector<32x32xf32>, vector<8x32xf32> -> vector<8x32xf32>
    "tpu.trace_stop"() : () -> ()
    %c0_22 = arith.constant 0 : index
    %c0_23 = arith.constant 0 : index
    %c0_24 = arith.constant 0 : index
    %69 = vector.load %arg6[%c0_22, %c0_23, %c0_24] : memref<2x1x32xf32, #tpu.memory_space<vmem>>, vector<1x1x32xf32>
    %70 = vector.shape_cast %69 : vector<1x1x32xf32> to vector<1x32xf32>
    %71 = vector.broadcast %70 : vector<1x32xf32> to vector<8x32xf32>
    %72 = arith.addf %68, %71 : vector<8x32xf32>
    %73 = arith.addf %1, %72 : vector<8x32xf32>
    %c0_25 = arith.constant 0 : index
    %c0_26 = arith.constant 0 : index
    %c0_27 = arith.constant 0 : index
    %74 = vector.load %arg7[%c0_25, %c0_26, %c0_27] : memref<2x1x32xf32, #tpu.memory_space<vmem>>, vector<1x1x32xf32>
    %75 = vector.shape_cast %74 : vector<1x1x32xf32> to vector<1x32xf32>
    %c0_28 = arith.constant 0 : index
    %c0_29 = arith.constant 0 : index
    %c0_30 = arith.constant 0 : index
    %76 = vector.load %arg8[%c0_28, %c0_29, %c0_30] : memref<2x1x32xf32, #tpu.memory_space<vmem>>, vector<1x1x32xf32>
    %77 = vector.shape_cast %76 : vector<1x1x32xf32> to vector<1x32xf32>
    %cst_31 = arith.constant dense<0.000000e+00> : vector<8xf32>
    %78 = vector.multi_reduction <add>, %73, %cst_31 [1] : vector<8x32xf32> to vector<8xf32>
    %79 = vector.shape_cast %78 : vector<8xf32> to vector<8x1xf32>
    %cst_32 = arith.constant 3.200000e+01 : f32
    %80 = vector.broadcast %cst_32 : f32 to vector<8x1xf32>
    %81 = arith.divf %79, %80 : vector<8x1xf32>
    %82 = vector.broadcast %81 : vector<8x1xf32> to vector<8x32xf32>
    %83 = arith.subf %73, %82 : vector<8x32xf32>
    %84 = arith.mulf %83, %83 : vector<8x32xf32>
    %cst_33 = arith.constant dense<0.000000e+00> : vector<8xf32>
    %85 = vector.multi_reduction <add>, %84, %cst_33 [1] : vector<8x32xf32> to vector<8xf32>
    %86 = vector.shape_cast %85 : vector<8xf32> to vector<8x1xf32>
    %cst_34 = arith.constant 3.200000e+01 : f32
    %87 = vector.broadcast %cst_34 : f32 to vector<8x1xf32>
    %88 = arith.divf %86, %87 : vector<8x1xf32>
    %89 = vector.broadcast %81 : vector<8x1xf32> to vector<8x32xf32>
    %90 = arith.subf %73, %89 : vector<8x32xf32>
    %cst_35 = arith.constant 9.99999974E-6 : f32
    %91 = vector.broadcast %cst_35 : f32 to vector<8x1xf32>
    %92 = arith.addf %88, %91 : vector<8x1xf32>
    %93 = math.rsqrt %92 : vector<8x1xf32>
    %94 = vector.broadcast %93 : vector<8x1xf32> to vector<8x32xf32>
    %95 = arith.mulf %90, %94 : vector<8x32xf32>
    %96 = vector.broadcast %75 : vector<1x32xf32> to vector<8x32xf32>
    %97 = arith.mulf %95, %96 : vector<8x32xf32>
    %98 = vector.broadcast %77 : vector<1x32xf32> to vector<8x32xf32>
    %99 = arith.addf %97, %98 : vector<8x32xf32>
    %c0_36 = arith.constant 0 : index
    %c0_37 = arith.constant 0 : index
    %c0_38 = arith.constant 0 : index
    %100 = vector.load %arg9[%c0_36, %c0_37, %c0_38] : memref<2x64x32xf32, #tpu.memory_space<vmem>>, vector<1x64x32xf32>
    %101 = vector.shape_cast %100 : vector<1x64x32xf32> to vector<64x32xf32>
    "tpu.trace_start"() <{level = 10 : i32, message = "sd,fd->sf"}> : () -> ()
    %cst_39 = arith.constant dense<0.000000e+00> : vector<8x64xf32>
    %102 = tpu.matmul %99, %101, %cst_39 {dimension_numbers = #tpu.dot_dimension_numbers<[1], [1], [0], [0], [0, 0, 1, 0], [], []>} : vector<8x32xf32>, vector<64x32xf32>, vector<8x64xf32> -> vector<8x64xf32>
    "tpu.trace_stop"() : () -> ()
    %c0_40 = arith.constant 0 : index
    %c0_41 = arith.constant 0 : index
    %c0_42 = arith.constant 0 : index
    %103 = vector.load %arg10[%c0_40, %c0_41, %c0_42] : memref<2x1x64xf32, #tpu.memory_space<vmem>>, vector<1x1x64xf32>
    %104 = vector.shape_cast %103 : vector<1x1x64xf32> to vector<1x64xf32>
    %105 = vector.broadcast %104 : vector<1x64xf32> to vector<8x64xf32>
    %106 = arith.addf %102, %105 : vector<8x64xf32>
    %cst_43 = arith.constant 0.000000e+00 : f32
    %107 = vector.broadcast %cst_43 : f32 to vector<8x64xf32>
    %108 = arith.maximumf %106, %107 : vector<8x64xf32>
    %c0_44 = arith.constant 0 : index
    %c0_45 = arith.constant 0 : index
    %c0_46 = arith.constant 0 : index
    %109 = vector.load %arg11[%c0_44, %c0_45, %c0_46] : memref<2x32x64xf32, #tpu.memory_space<vmem>>, vector<1x32x64xf32>
    %110 = vector.shape_cast %109 : vector<1x32x64xf32> to vector<32x64xf32>
    "tpu.trace_start"() <{level = 10 : i32, message = "sf,df->sd"}> : () -> ()
    %cst_47 = arith.constant dense<0.000000e+00> : vector<8x32xf32>
    %111 = tpu.matmul %108, %110, %cst_47 {dimension_numbers = #tpu.dot_dimension_numbers<[1], [1], [0], [0], [0, 0, 1, 0], [], []>} : vector<8x64xf32>, vector<32x64xf32>, vector<8x32xf32> -> vector<8x32xf32>
    "tpu.trace_stop"() : () -> ()
    %c0_48 = arith.constant 0 : index
    %c0_49 = arith.constant 0 : index
    %c0_50 = arith.constant 0 : index
    %112 = vector.load %arg12[%c0_48, %c0_49, %c0_50] : memref<2x1x32xf32, #tpu.memory_space<vmem>>, vector<1x1x32xf32>
    %113 = vector.shape_cast %112 : vector<1x1x32xf32> to vector<1x32xf32>
    %114 = vector.broadcast %113 : vector<1x32xf32> to vector<8x32xf32>
    %115 = arith.addf %111, %114 : vector<8x32xf32>
    %116 = arith.addf %99, %115 : vector<8x32xf32>
    %c0_51 = arith.constant 0 : index
    %c0_52 = arith.constant 0 : index
    %c0_53 = arith.constant 0 : index
    %117 = vector.load %arg13[%c0_51, %c0_52, %c0_53] : memref<2x1x32xf32, #tpu.memory_space<vmem>>, vector<1x1x32xf32>
    %118 = vector.shape_cast %117 : vector<1x1x32xf32> to vector<1x32xf32>
    %c0_54 = arith.constant 0 : index
    %c0_55 = arith.constant 0 : index
    %c0_56 = arith.constant 0 : index
    %119 = vector.load %arg14[%c0_54, %c0_55, %c0_56] : memref<2x1x32xf32, #tpu.memory_space<vmem>>, vector<1x1x32xf32>
    %120 = vector.shape_cast %119 : vector<1x1x32xf32> to vector<1x32xf32>
    %cst_57 = arith.constant dense<0.000000e+00> : vector<8xf32>
    %121 = vector.multi_reduction <add>, %116, %cst_57 [1] : vector<8x32xf32> to vector<8xf32>
    %122 = vector.shape_cast %121 : vector<8xf32> to vector<8x1xf32>
    %cst_58 = arith.constant 3.200000e+01 : f32
    %123 = vector.broadcast %cst_58 : f32 to vector<8x1xf32>
    %124 = arith.divf %122, %123 : vector<8x1xf32>
    %125 = vector.broadcast %124 : vector<8x1xf32> to vector<8x32xf32>
    %126 = arith.subf %116, %125 : vector<8x32xf32>
    %127 = arith.mulf %126, %126 : vector<8x32xf32>
    %cst_59 = arith.constant dense<0.000000e+00> : vector<8xf32>
    %128 = vector.multi_reduction <add>, %127, %cst_59 [1] : vector<8x32xf32> to vector<8xf32>
    %129 = vector.shape_cast %128 : vector<8xf32> to vector<8x1xf32>
    %cst_60 = arith.constant 3.200000e+01 : f32
    %130 = vector.broadcast %cst_60 : f32 to vector<8x1xf32>
    %131 = arith.divf %129, %130 : vector<8x1xf32>
    %132 = vector.broadcast %124 : vector<8x1xf32> to vector<8x32xf32>
    %133 = arith.subf %116, %132 : vector<8x32xf32>
    %cst_61 = arith.constant 9.99999974E-6 : f32
    %134 = vector.broadcast %cst_61 : f32 to vector<8x1xf32>
    %135 = arith.addf %131, %134 : vector<8x1xf32>
    %136 = math.rsqrt %135 : vector<8x1xf32>
    %137 = vector.broadcast %136 : vector<8x1xf32> to vector<8x32xf32>
    %138 = arith.mulf %133, %137 : vector<8x32xf32>
    %139 = vector.broadcast %118 : vector<1x32xf32> to vector<8x32xf32>
    %140 = arith.mulf %138, %139 : vector<8x32xf32>
    %141 = vector.broadcast %120 : vector<1x32xf32> to vector<8x32xf32>
    %142 = arith.addf %140, %141 : vector<8x32xf32>
    %c1 = arith.constant 1 : index
    %c0_62 = arith.constant 0 : index
    %c0_63 = arith.constant 0 : index
    %143 = vector.load %arg3[%c1, %c0_62, %c0_63] : memref<2x96x32xf32, #tpu.memory_space<vmem>>, vector<1x96x32xf32>
    %144 = vector.shape_cast %143 : vector<1x96x32xf32> to vector<96x32xf32>
    "tpu.trace_start"() <{level = 10 : i32, message = "sd,ed->se"}> : () -> ()
    %cst_64 = arith.constant dense<0.000000e+00> : vector<8x96xf32>
    %145 = tpu.matmul %142, %144, %cst_64 {dimension_numbers = #tpu.dot_dimension_numbers<[1], [1], [0], [0], [0, 0, 1, 0], [], []>} : vector<8x32xf32>, vector<96x32xf32>, vector<8x96xf32> -> vector<8x96xf32>
    "tpu.trace_stop"() : () -> ()
    %c1_65 = arith.constant 1 : index
    %c0_66 = arith.constant 0 : index
    %c0_67 = arith.constant 0 : index
    %146 = vector.load %arg4[%c1_65, %c0_66, %c0_67] : memref<2x1x96xf32, #tpu.memory_space<vmem>>, vector<1x1x96xf32>
    %147 = vector.shape_cast %146 : vector<1x1x96xf32> to vector<1x96xf32>
    %148 = vector.broadcast %147 : vector<1x96xf32> to vector<8x96xf32>
    %149 = arith.addf %145, %148 : vector<8x96xf32>
    %150 = vector.extract_strided_slice %149 {offsets = [0, 0], sizes = [8, 8], strides = [1, 1]} : vector<8x96xf32> to vector<8x8xf32>
    %151 = vector.extract_strided_slice %149 {offsets = [0, 8], sizes = [8, 8], strides = [1, 1]} : vector<8x96xf32> to vector<8x8xf32>
    %152 = vector.extract_strided_slice %149 {offsets = [0, 16], sizes = [8, 8], strides = [1, 1]} : vector<8x96xf32> to vector<8x8xf32>
    %153 = vector.extract_strided_slice %149 {offsets = [0, 24], sizes = [8, 8], strides = [1, 1]} : vector<8x96xf32> to vector<8x8xf32>
    %154 = vector.shape_cast %150 : vector<8x8xf32> to vector<1x8x8xf32>
    %155 = vector.shape_cast %151 : vector<8x8xf32> to vector<1x8x8xf32>
    %156 = vector.shape_cast %152 : vector<8x8xf32> to vector<1x8x8xf32>
    %157 = vector.shape_cast %153 : vector<8x8xf32> to vector<1x8x8xf32>
    %158 = tpu.concatenate %154, %155, %156, %157 in 0 : vector<1x8x8xf32>, vector<1x8x8xf32>, vector<1x8x8xf32>, vector<1x8x8xf32> -> vector<4x8x8xf32>
    %159 = vector.extract_strided_slice %149 {offsets = [0, 32], sizes = [8, 8], strides = [1, 1]} : vector<8x96xf32> to vector<8x8xf32>
    %160 = vector.extract_strided_slice %149 {offsets = [0, 40], sizes = [8, 8], strides = [1, 1]} : vector<8x96xf32> to vector<8x8xf32>
    %161 = vector.extract_strided_slice %149 {offsets = [0, 48], sizes = [8, 8], strides = [1, 1]} : vector<8x96xf32> to vector<8x8xf32>
    %162 = vector.extract_strided_slice %149 {offsets = [0, 56], sizes = [8, 8], strides = [1, 1]} : vector<8x96xf32> to vector<8x8xf32>
    %163 = vector.shape_cast %159 : vector<8x8xf32> to vector<1x8x8xf32>
    %164 = vector.shape_cast %160 : vector<8x8xf32> to vector<1x8x8xf32>
    %165 = vector.shape_cast %161 : vector<8x8xf32> to vector<1x8x8xf32>
    %166 = vector.shape_cast %162 : vector<8x8xf32> to vector<1x8x8xf32>
    %167 = tpu.concatenate %163, %164, %165, %166 in 0 : vector<1x8x8xf32>, vector<1x8x8xf32>, vector<1x8x8xf32>, vector<1x8x8xf32> -> vector<4x8x8xf32>
    %168 = vector.extract_strided_slice %149 {offsets = [0, 64], sizes = [8, 8], strides = [1, 1]} : vector<8x96xf32> to vector<8x8xf32>
    %169 = vector.extract_strided_slice %149 {offsets = [0, 72], sizes = [8, 8], strides = [1, 1]} : vector<8x96xf32> to vector<8x8xf32>
    %170 = vector.extract_strided_slice %149 {offsets = [0, 80], sizes = [8, 8], strides = [1, 1]} : vector<8x96xf32> to vector<8x8xf32>
    %171 = vector.extract_strided_slice %149 {offsets = [0, 88], sizes = [8, 8], strides = [1, 1]} : vector<8x96xf32> to vector<8x8xf32>
    %172 = vector.shape_cast %168 : vector<8x8xf32> to vector<1x8x8xf32>
    %173 = vector.shape_cast %169 : vector<8x8xf32> to vector<1x8x8xf32>
    %174 = vector.shape_cast %170 : vector<8x8xf32> to vector<1x8x8xf32>
    %175 = vector.shape_cast %171 : vector<8x8xf32> to vector<1x8x8xf32>
    %176 = tpu.concatenate %172, %173, %174, %175 in 0 : vector<1x8x8xf32>, vector<1x8x8xf32>, vector<1x8x8xf32>, vector<1x8x8xf32> -> vector<4x8x8xf32>
    "tpu.trace_start"() <{level = 10 : i32, message = "hqd,hkd->hqk"}> : () -> ()
    %cst_68 = arith.constant dense<0.000000e+00> : vector<4x8x8xf32>
    %177 = tpu.matmul %158, %167, %cst_68 {dimension_numbers = #tpu.dot_dimension_numbers<[2], [2], [1], [1], [0, 0, 0, 1, 1, 1], [0], [0]>} : vector<4x8x8xf32>, vector<4x8x8xf32>, vector<4x8x8xf32> -> vector<4x8x8xf32>
    "tpu.trace_stop"() : () -> ()
    %cst_69 = arith.constant 0.353553385 : f32
    %178 = vector.broadcast %cst_69 : f32 to vector<4x8x8xf32>
    %179 = arith.mulf %177, %178 : vector<4x8x8xf32>
    %180 = vector.broadcast %6 : vector<1x1x8xf32> to vector<4x8x8xf32>
    %181 = arith.addf %179, %180 : vector<4x8x8xf32>
    %cst_70 = arith.constant dense<0xFF800000> : vector<4x8xf32>
    %182 = vector.multi_reduction <maximumf>, %181, %cst_70 [2] : vector<4x8x8xf32> to vector<4x8xf32>
    %183 = vector.shape_cast %182 : vector<4x8xf32> to vector<4x8x1xf32>
    %184 = vector.broadcast %183 : vector<4x8x1xf32> to vector<4x8x8xf32>
    %185 = arith.subf %181, %184 : vector<4x8x8xf32>
    %186 = math.exp %185 : vector<4x8x8xf32>
    %cst_71 = arith.constant dense<0.000000e+00> : vector<4x8xf32>
    %187 = vector.multi_reduction <add>, %186, %cst_71 [2] : vector<4x8x8xf32> to vector<4x8xf32>
    %188 = vector.shape_cast %187 : vector<4x8xf32> to vector<4x8x1xf32>
    %189 = tpu.reciprocal %188 {approx = true} : vector<4x8x1xf32> -> vector<4x8x1xf32>
    %190 = vector.broadcast %189 : vector<4x8x1xf32> to vector<4x8x8xf32>
    %191 = arith.mulf %186, %190 : vector<4x8x8xf32>
    "tpu.trace_start"() <{level = 10 : i32, message = "hqk,hkd->hqd"}> : () -> ()
    %cst_72 = arith.constant dense<0.000000e+00> : vector<4x8x8xf32>
    %192 = tpu.matmul %191, %176, %cst_72 {dimension_numbers = #tpu.dot_dimension_numbers<[2], [1], [1], [2], [0, 0, 0, 1, 1, 2], [0], [0]>} : vector<4x8x8xf32>, vector<4x8x8xf32>, vector<4x8x8xf32> -> vector<4x8x8xf32>
    "tpu.trace_stop"() : () -> ()
    %193 = vector.extract_strided_slice %192 {offsets = [0, 0, 0], sizes = [1, 8, 8], strides = [1, 1, 1]} : vector<4x8x8xf32> to vector<1x8x8xf32>
    %194 = vector.shape_cast %193 : vector<1x8x8xf32> to vector<8x8xf32>
    %195 = vector.extract_strided_slice %192 {offsets = [1, 0, 0], sizes = [1, 8, 8], strides = [1, 1, 1]} : vector<4x8x8xf32> to vector<1x8x8xf32>
    %196 = vector.shape_cast %195 : vector<1x8x8xf32> to vector<8x8xf32>
    %197 = vector.extract_strided_slice %192 {offsets = [2, 0, 0], sizes = [1, 8, 8], strides = [1, 1, 1]} : vector<4x8x8xf32> to vector<1x8x8xf32>
    %198 = vector.shape_cast %197 : vector<1x8x8xf32> to vector<8x8xf32>
    %199 = vector.extract_strided_slice %192 {offsets = [3, 0, 0], sizes = [1, 8, 8], strides = [1, 1, 1]} : vector<4x8x8xf32> to vector<1x8x8xf32>
    %200 = vector.shape_cast %199 : vector<1x8x8xf32> to vector<8x8xf32>
    %201 = tpu.concatenate %194, %196, %198, %200 in 1 : vector<8x8xf32>, vector<8x8xf32>, vector<8x8xf32>, vector<8x8xf32> -> vector<8x32xf32>
    %c1_73 = arith.constant 1 : index
    %c0_74 = arith.constant 0 : index
    %c0_75 = arith.constant 0 : index
    %202 = vector.load %arg5[%c1_73, %c0_74, %c0_75] : memref<2x32x32xf32, #tpu.memory_space<vmem>>, vector<1x32x32xf32>
    %203 = vector.shape_cast %202 : vector<1x32x32xf32> to vector<32x32xf32>
    "tpu.trace_start"() <{level = 10 : i32, message = "sd,ed->se"}> : () -> ()
    %cst_76 = arith.constant dense<0.000000e+00> : vector<8x32xf32>
    %204 = tpu.matmul %201, %203, %cst_76 {dimension_numbers = #tpu.dot_dimension_numbers<[1], [1], [0], [0], [0, 0, 1, 0], [], []>} : vector<8x32xf32>, vector<32x32xf32>, vector<8x32xf32> -> vector<8x32xf32>
    "tpu.trace_stop"() : () -> ()
    %c1_77 = arith.constant 1 : index
    %c0_78 = arith.constant 0 : index
    %c0_79 = arith.constant 0 : index
    %205 = vector.load %arg6[%c1_77, %c0_78, %c0_79] : memref<2x1x32xf32, #tpu.memory_space<vmem>>, vector<1x1x32xf32>
    %206 = vector.shape_cast %205 : vector<1x1x32xf32> to vector<1x32xf32>
    %207 = vector.broadcast %206 : vector<1x32xf32> to vector<8x32xf32>
    %208 = arith.addf %204, %207 : vector<8x32xf32>
    %209 = arith.addf %142, %208 : vector<8x32xf32>
    %c1_80 = arith.constant 1 : index
    %c0_81 = arith.constant 0 : index
    %c0_82 = arith.constant 0 : index
    %210 = vector.load %arg7[%c1_80, %c0_81, %c0_82] : memref<2x1x32xf32, #tpu.memory_space<vmem>>, vector<1x1x32xf32>
    %211 = vector.shape_cast %210 : vector<1x1x32xf32> to vector<1x32xf32>
    %c1_83 = arith.constant 1 : index
    %c0_84 = arith.constant 0 : index
    %c0_85 = arith.constant 0 : index
    %212 = vector.load %arg8[%c1_83, %c0_84, %c0_85] : memref<2x1x32xf32, #tpu.memory_space<vmem>>, vector<1x1x32xf32>
    %213 = vector.shape_cast %212 : vector<1x1x32xf32> to vector<1x32xf32>
    %cst_86 = arith.constant dense<0.000000e+00> : vector<8xf32>
    %214 = vector.multi_reduction <add>, %209, %cst_86 [1] : vector<8x32xf32> to vector<8xf32>
    %215 = vector.shape_cast %214 : vector<8xf32> to vector<8x1xf32>
    %cst_87 = arith.constant 3.200000e+01 : f32
    %216 = vector.broadcast %cst_87 : f32 to vector<8x1xf32>
    %217 = arith.divf %215, %216 : vector<8x1xf32>
    %218 = vector.broadcast %217 : vector<8x1xf32> to vector<8x32xf32>
    %219 = arith.subf %209, %218 : vector<8x32xf32>
    %220 = arith.mulf %219, %219 : vector<8x32xf32>
    %cst_88 = arith.constant dense<0.000000e+00> : vector<8xf32>
    %221 = vector.multi_reduction <add>, %220, %cst_88 [1] : vector<8x32xf32> to vector<8xf32>
    %222 = vector.shape_cast %221 : vector<8xf32> to vector<8x1xf32>
    %cst_89 = arith.constant 3.200000e+01 : f32
    %223 = vector.broadcast %cst_89 : f32 to vector<8x1xf32>
    %224 = arith.divf %222, %223 : vector<8x1xf32>
    %225 = vector.broadcast %217 : vector<8x1xf32> to vector<8x32xf32>
    %226 = arith.subf %209, %225 : vector<8x32xf32>
    %cst_90 = arith.constant 9.99999974E-6 : f32
    %227 = vector.broadcast %cst_90 : f32 to vector<8x1xf32>
    %228 = arith.addf %224, %227 : vector<8x1xf32>
    %229 = math.rsqrt %228 : vector<8x1xf32>
    %230 = vector.broadcast %229 : vector<8x1xf32> to vector<8x32xf32>
    %231 = arith.mulf %226, %230 : vector<8x32xf32>
    %232 = vector.broadcast %211 : vector<1x32xf32> to vector<8x32xf32>
    %233 = arith.mulf %231, %232 : vector<8x32xf32>
    %234 = vector.broadcast %213 : vector<1x32xf32> to vector<8x32xf32>
    %235 = arith.addf %233, %234 : vector<8x32xf32>
    %c1_91 = arith.constant 1 : index
    %c0_92 = arith.constant 0 : index
    %c0_93 = arith.constant 0 : index
    %236 = vector.load %arg9[%c1_91, %c0_92, %c0_93] : memref<2x64x32xf32, #tpu.memory_space<vmem>>, vector<1x64x32xf32>
    %237 = vector.shape_cast %236 : vector<1x64x32xf32> to vector<64x32xf32>
    "tpu.trace_start"() <{level = 10 : i32, message = "sd,fd->sf"}> : () -> ()
    %cst_94 = arith.constant dense<0.000000e+00> : vector<8x64xf32>
    %238 = tpu.matmul %235, %237, %cst_94 {dimension_numbers = #tpu.dot_dimension_numbers<[1], [1], [0], [0], [0, 0, 1, 0], [], []>} : vector<8x32xf32>, vector<64x32xf32>, vector<8x64xf32> -> vector<8x64xf32>
    "tpu.trace_stop"() : () -> ()
    %c1_95 = arith.constant 1 : index
    %c0_96 = arith.constant 0 : index
    %c0_97 = arith.constant 0 : index
    %239 = vector.load %arg10[%c1_95, %c0_96, %c0_97] : memref<2x1x64xf32, #tpu.memory_space<vmem>>, vector<1x1x64xf32>
    %240 = vector.shape_cast %239 : vector<1x1x64xf32> to vector<1x64xf32>
    %241 = vector.broadcast %240 : vector<1x64xf32> to vector<8x64xf32>
    %242 = arith.addf %238, %241 : vector<8x64xf32>
    %cst_98 = arith.constant 0.000000e+00 : f32
    %243 = vector.broadcast %cst_98 : f32 to vector<8x64xf32>
    %244 = arith.maximumf %242, %243 : vector<8x64xf32>
    %c1_99 = arith.constant 1 : index
    %c0_100 = arith.constant 0 : index
    %c0_101 = arith.constant 0 : index
    %245 = vector.load %arg11[%c1_99, %c0_100, %c0_101] : memref<2x32x64xf32, #tpu.memory_space<vmem>>, vector<1x32x64xf32>
    %246 = vector.shape_cast %245 : vector<1x32x64xf32> to vector<32x64xf32>
    "tpu.trace_start"() <{level = 10 : i32, message = "sf,df->sd"}> : () -> ()
    %cst_102 = arith.constant dense<0.000000e+00> : vector<8x32xf32>
    %247 = tpu.matmul %244, %246, %cst_102 {dimension_numbers = #tpu.dot_dimension_numbers<[1], [1], [0], [0], [0, 0, 1, 0], [], []>} : vector<8x64xf32>, vector<32x64xf32>, vector<8x32xf32> -> vector<8x32xf32>
    "tpu.trace_stop"() : () -> ()
    %c1_103 = arith.constant 1 : index
    %c0_104 = arith.constant 0 : index
    %c0_105 = arith.constant 0 : index
    %248 = vector.load %arg12[%c1_103, %c0_104, %c0_105] : memref<2x1x32xf32, #tpu.memory_space<vmem>>, vector<1x1x32xf32>
    %249 = vector.shape_cast %248 : vector<1x1x32xf32> to vector<1x32xf32>
    %250 = vector.broadcast %249 : vector<1x32xf32> to vector<8x32xf32>
    %251 = arith.addf %247, %250 : vector<8x32xf32>
    %252 = arith.addf %235, %251 : vector<8x32xf32>
    %c1_106 = arith.constant 1 : index
    %c0_107 = arith.constant 0 : index
    %c0_108 = arith.constant 0 : index
    %253 = vector.load %arg13[%c1_106, %c0_107, %c0_108] : memref<2x1x32xf32, #tpu.memory_space<vmem>>, vector<1x1x32xf32>
    %254 = vector.shape_cast %253 : vector<1x1x32xf32> to vector<1x32xf32>
    %c1_109 = arith.constant 1 : index
    %c0_110 = arith.constant 0 : index
    %c0_111 = arith.constant 0 : index
    %255 = vector.load %arg14[%c1_109, %c0_110, %c0_111] : memref<2x1x32xf32, #tpu.memory_space<vmem>>, vector<1x1x32xf32>
    %256 = vector.shape_cast %255 : vector<1x1x32xf32> to vector<1x32xf32>
    %cst_112 = arith.constant dense<0.000000e+00> : vector<8xf32>
    %257 = vector.multi_reduction <add>, %252, %cst_112 [1] : vector<8x32xf32> to vector<8xf32>
    %258 = vector.shape_cast %257 : vector<8xf32> to vector<8x1xf32>
    %cst_113 = arith.constant 3.200000e+01 : f32
    %259 = vector.broadcast %cst_113 : f32 to vector<8x1xf32>
    %260 = arith.divf %258, %259 : vector<8x1xf32>
    %261 = vector.broadcast %260 : vector<8x1xf32> to vector<8x32xf32>
    %262 = arith.subf %252, %261 : vector<8x32xf32>
    %263 = arith.mulf %262, %262 : vector<8x32xf32>
    %cst_114 = arith.constant dense<0.000000e+00> : vector<8xf32>
    %264 = vector.multi_reduction <add>, %263, %cst_114 [1] : vector<8x32xf32> to vector<8xf32>
    %265 = vector.shape_cast %264 : vector<8xf32> to vector<8x1xf32>
    %cst_115 = arith.constant 3.200000e+01 : f32
    %266 = vector.broadcast %cst_115 : f32 to vector<8x1xf32>
    %267 = arith.divf %265, %266 : vector<8x1xf32>
    %268 = vector.broadcast %260 : vector<8x1xf32> to vector<8x32xf32>
    %269 = arith.subf %252, %268 : vector<8x32xf32>
    %cst_116 = arith.constant 9.99999974E-6 : f32
    %270 = vector.broadcast %cst_116 : f32 to vector<8x1xf32>
    %271 = arith.addf %267, %270 : vector<8x1xf32>
    %272 = math.rsqrt %271 : vector<8x1xf32>
    %273 = vector.broadcast %272 : vector<8x1xf32> to vector<8x32xf32>
    %274 = arith.mulf %269, %273 : vector<8x32xf32>
    %275 = vector.broadcast %254 : vector<1x32xf32> to vector<8x32xf32>
    %276 = arith.mulf %274, %275 : vector<8x32xf32>
    %277 = vector.broadcast %256 : vector<1x32xf32> to vector<8x32xf32>
    %278 = arith.addf %276, %277 : vector<8x32xf32>
    %c0_117 = arith.constant 0 : index
    %c0_118 = arith.constant 0 : index
    %279 = vector.load %arg15[%c0_117, %c0_118] : memref<16x32xf32, #tpu.memory_space<vmem>>, vector<16x32xf32>
    "tpu.trace_start"() <{level = 10 : i32, message = "sd,ld->sl"}> : () -> ()
    %cst_119 = arith.constant dense<0.000000e+00> : vector<8x16xf32>
    %280 = tpu.matmul %278, %279, %cst_119 {dimension_numbers = #tpu.dot_dimension_numbers<[1], [1], [0], [0], [0, 0, 1, 0], [], []>} : vector<8x32xf32>, vector<16x32xf32>, vector<8x16xf32> -> vector<8x16xf32>
    "tpu.trace_stop"() : () -> ()
    %c0_120 = arith.constant 0 : index
    %c0_121 = arith.constant 0 : index
    %281 = vector.load %arg16[%c0_120, %c0_121] : memref<1x16xf32, #tpu.memory_space<vmem>>, vector<1x16xf32>
    %282 = vector.broadcast %281 : vector<1x16xf32> to vector<8x16xf32>
    %283 = arith.addf %280, %282 : vector<8x16xf32>
    %c0_122 = arith.constant 0 : index
    %c0_123 = arith.constant 0 : index
    %c0_124 = arith.constant 0 : index
    %284 = vector.load %arg17[%c0_122, %c0_123, %c0_124] : memref<1x8x16xf32, #tpu.memory_space<vmem>>, vector<1x8x16xf32>
    %285 = vector.shape_cast %284 : vector<1x8x16xf32> to vector<8x16xf32>
    %286 = vector.shape_cast %283 : vector<8x16xf32> to vector<1x8x16xf32>
    tpu.vector_store %arg17[%c0_122, %c0_123, %c0_124], %286 {strides = array<i32>} : memref<1x8x16xf32, #tpu.memory_space<vmem>>, vector<1x8x16xf32>,
    return
  }
  func.func @transform_0(%arg0: i32) -> (i32, i32, i32) {
    %c0_i32 = arith.constant 0 : i32
    %c0_i32_0 = arith.constant 0 : i32
    %c0_i32_1 = arith.constant 0 : i32
    return %arg0, %c0_i32, %c0_i32_0 : i32, i32, i32
  }
  func.func @transform_1(%arg0: i32) -> (i32, i32, i32) {
    %c0_i32 = arith.constant 0 : i32
    %c0_i32_0 = arith.constant 0 : i32
    %c0_i32_1 = arith.constant 0 : i32
    return %arg0, %c0_i32, %c0_i32_0 : i32, i32, i32
  }
  func.func @transform_2(%arg0: i32) -> (i32, i32, i32) {
    %c0_i32 = arith.constant 0 : i32
    %c0_i32_0 = arith.constant 0 : i32
    %c0_i32_1 = arith.constant 0 : i32
    %c0_i32_2 = arith.constant 0 : i32
    return %c0_i32, %c0_i32_0, %c0_i32_1 : i32, i32, i32
  }
  func.func @transform_3(%arg0: i32) -> (i32, i32, i32) {
    %c0_i32 = arith.constant 0 : i32
    %c0_i32_0 = arith.constant 0 : i32
    %c0_i32_1 = arith.constant 0 : i32
    %c0_i32_2 = arith.constant 0 : i32
    return %c0_i32, %c0_i32_0, %c0_i32_1 : i32, i32, i32
  }
  func.func @transform_4(%arg0: i32) -> (i32, i32, i32) {
    %c0_i32 = arith.constant 0 : i32
    %c0_i32_0 = arith.constant 0 : i32
    %c0_i32_1 = arith.constant 0 : i32
    %c0_i32_2 = arith.constant 0 : i32
    return %c0_i32, %c0_i32_0, %c0_i32_1 : i32, i32, i32
  }
  func.func @transform_5(%arg0: i32) -> (i32, i32, i32) {
    %c0_i32 = arith.constant 0 : i32
    %c0_i32_0 = arith.constant 0 : i32
    %c0_i32_1 = arith.constant 0 : i32
    %c0_i32_2 = arith.constant 0 : i32
    return %c0_i32, %c0_i32_0, %c0_i32_1 : i32, i32, i32
  }
  func.func @transform_6(%arg0: i32) -> (i32, i32, i32) {
    %c0_i32 = arith.constant 0 : i32
    %c0_i32_0 = arith.constant 0 : i32
    %c0_i32_1 = arith.constant 0 : i32
    %c0_i32_2 = arith.constant 0 : i32
    return %c0_i32, %c0_i32_0, %c0_i32_1 : i32, i32, i32
  }
  func.func @transform_7(%arg0: i32) -> (i32, i32, i32) {
    %c0_i32 = arith.constant 0 : i32
    %c0_i32_0 = arith.constant 0 : i32
    %c0_i32_1 = arith.constant 0 : i32
    %c0_i32_2 = arith.constant 0 : i32
    return %c0_i32, %c0_i32_0, %c0_i32_1 : i32, i32, i32
  }
  func.func @transform_8(%arg0: i32) -> (i32, i32, i32) {
    %c0_i32 = arith.constant 0 : i32
    %c0_i32_0 = arith.constant 0 : i32
    %c0_i32_1 = arith.constant 0 : i32
    %c0_i32_2 = arith.constant 0 : i32
    return %c0_i32, %c0_i32_0, %c0_i32_1 : i32, i32, i32
  }
  func.func @transform_9(%arg0: i32) -> (i32, i32, i32) {
    %c0_i32 = arith.constant 0 : i32
    %c0_i32_0 = arith.constant 0 : i32
    %c0_i32_1 = arith.constant 0 : i32
    %c0_i32_2 = arith.constant 0 : i32
    return %c0_i32, %c0_i32_0, %c0_i32_1 : i32, i32, i32
  }
  func.func @transform_10(%arg0: i32) -> (i32, i32, i32) {
    %c0_i32 = arith.constant 0 : i32
    %c0_i32_0 = arith.constant 0 : i32
    %c0_i32_1 = arith.constant 0 : i32
    %c0_i32_2 = arith.constant 0 : i32
    return %c0_i32, %c0_i32_0, %c0_i32_1 : i32, i32, i32
  }
  func.func @transform_11(%arg0: i32) -> (i32, i32, i32) {
    %c0_i32 = arith.constant 0 : i32
    %c0_i32_0 = arith.constant 0 : i32
    %c0_i32_1 = arith.constant 0 : i32
    %c0_i32_2 = arith.constant 0 : i32
    return %c0_i32, %c0_i32_0, %c0_i32_1 : i32, i32, i32
  }
  func.func @transform_12(%arg0: i32) -> (i32, i32, i32) {
    %c0_i32 = arith.constant 0 : i32
    %c0_i32_0 = arith.constant 0 : i32
    %c0_i32_1 = arith.constant 0 : i32
    %c0_i32_2 = arith.constant 0 : i32
    return %c0_i32, %c0_i32_0, %c0_i32_1 : i32, i32, i32
  }
  func.func @transform_13(%arg0: i32) -> (i32, i32, i32) {
    %c0_i32 = arith.constant 0 : i32
    %c0_i32_0 = arith.constant 0 : i32
    %c0_i32_1 = arith.constant 0 : i32
    %c0_i32_2 = arith.constant 0 : i32
    return %c0_i32, %c0_i32_0, %c0_i32_1 : i32, i32, i32
  }
  func.func @transform_14(%arg0: i32) -> (i32, i32) {
    %c0_i32 = arith.constant 0 : i32
    %c0_i32_0 = arith.constant 0 : i32
    %c0_i32_1 = arith.constant 0 : i32
    return %c0_i32, %c0_i32_0 : i32, i32
  }
  func.func @transform_15(%arg0: i32) -> (i32, i32) {
    %c0_i32 = arith.constant 0 : i32
    %c0_i32_0 = arith.constant 0 : i32
    %c0_i32_1 = arith.constant 0 : i32
    return %c0_i32, %c0_i32_0 : i32, i32
  }
  func.func @transform_16(%arg0: i32) -> (i32, i32, i32) {
    %c0_i32 = arith.constant 0 : i32
    %c0_i32_0 = arith.constant 0 : i32
    %c0_i32_1 = arith.constant 0 : i32
    return %arg0, %c0_i32, %c0_i32_0 : i32, i32, i32
  }
}

</mosaic_0001>

<bundles_post_ra>
// kernel: lp_bert_forward.1
= control target key start
LH: loop header
LB: loop body
LE: loop exit
PB: predicated region body
PF: predicated region fallthrough
CT: control target
= control target key end

     0   :  { %s4566_s0 = inlined_call_operand.vmem [shape: f32[2,8,32], index: 0, kind: input, shape index: {}]   ;;  %s4567_s1 = inlined_call_operand.vmem [shape: f32[2,1,8], index: 1, kind: input, shape index: {}]   ;;  %s4568_s2 = inlined_call_operand.vmem [shape: f32[2,96,32], index: 2, kind: input, shape index: {}]   ;;  %s4569_s3 = inlined_call_operand.vmem [shape: f32[2,1,96], index: 3, kind: input, shape index: {}]   ;;  %s4570_s4 = inlined_call_operand.vmem [shape: f32[2,32,32], index: 4, kind: input, shape index: {}]   ;;  %s4571_s5 = inlined_call_operand.vmem [shape: f32[2,1,32], index: 5, kind: input, shape index: {}]   ;;  %s4572_s6 = inlined_call_operand.vmem [shape: f32[2,1,32], index: 6, kind: input, shape index: {}]   ;;  %s4573_s7 = inlined_call_operand.vmem [shape: f32[2,1,32], index: 7, kind: input, shape index: {}]   ;;  %s4574_s8 = inlined_call_operand.vmem [shape: f32[2,64,32], index: 8, kind: input, shape index: {}]   ;;  %s4575_s9 = inlined_call_operand.vmem [shape: f32[2,1,64], index: 9, kind: input, shape index: {}]   ;;  %s4576_s10 = inlined_call_operand.vmem [shape: f32[2,32,64], index: 10, kind: input, shape index: {}]   ;;  %s4577_s11 = inlined_call_operand.vmem [shape: f32[2,1,32], index: 11, kind: input, shape index: {}]   ;;  %s4578_s12 = inlined_call_operand.vmem [shape: f32[2,1,32], index: 12, kind: input, shape index: {}]   ;;  %s4579_s13 = inlined_call_operand.vmem [shape: f32[2,1,32], index: 13, kind: input, shape index: {}]   ;;  %s4580_s14 = inlined_call_operand.vmem [shape: f32[16,32], index: 14, kind: input, shape index: {}]   ;;  %s4581_s15 = inlined_call_operand.vmem [shape: f32[1,16], index: 15, kind: input, shape index: {}]   ;;  %s4582_s16 = inlined_call_operand.hbm [shape: f32[2,8,16], index: 16, kind: output, shape index: {}]  }
   0x1   :  { %4595 = sst [smem:[#allocation9_spill]] %s4566_s0 }
   0x2   :  { %4596 = sst [smem:[#allocation10_spill]] %s4567_s1 }
   0x3   :  { %21 = vsyncpa [#allocation3], 0 }
   0x4   :  { %23 = vsyncpa [#allocation3 + $0x1], 0  ;;  %s3923_s21 = smov 0   ;;  %s3925_s22 = smov 0  }
   0x5   :  { %s3927_s23 = smov 0   ;;  %s3929_s24 = smov 0  }
   0x6 LB: > { %4597 = sst [smem:[#allocation5_spill]] %s3820_s23  ;;  %s3944_s25 = sadd.s32 4294967295, %s3824_s24   ;;  %s3824_s24 = sphi %s3929_s24, %s4616_s24   ;;  %s3820_s23 = sphi %s3927_s23, %s4618_s23   ;;  %s3816_s22 = sphi %s3925_s22, %s4620_s22   ;;  %s3812_s21 = sphi %s3923_s21, %s4619_s21  }
   0x7   : > { %s3080_s26 = sadd.s32 4294967294, %s3824_s24   ;;  %s3948_s27 = sadd.s32 1, %s3824_s24  }
   0x8   : > { %4598 = sst [smem:[#allocation6_spill]] %s3948_s27  ;;  %s382_s28 = sadd.s32 1, %s3820_s23 }
   0x9   : > { %s379_s29 = ssub.s32 %s3824_s24, %s3948_s27  ;;  %p392_p0 = scmp.ne.s32.totalorder %s3820_s23, %s3816_s22 }
   0xa   : > { %p380_p1 = scmp.eq.s32.totalorder %s379_s29, 0  ;;  %p393_p2 = scmp.eq.s32.totalorder %s3944_s25, 1 }
   0xb   : > { %p398_p3 = scmp.ne.s32.totalorder %s3816_s22, %s3812_s21  ;;  %p399_p4 = scmp.eq.s32.totalorder %s3080_s26, 1 }
   0xc   : > { %s3959_s30 = scalar_select %p380_p1, %s3820_s23, %s382_s28  }
   0xd   : > { %p3961_p5 = por %p393_p2, %p392_p0  ;;  %p3965_p6 = por %p399_p4, %p398_p3 }
   0xe   : > { %4599 = sst [smem:[#allocation7_spill]] %s3959_s30  ;;  %p3083_p7 = scmp.ge.s32.totalorder %s3824_s24, 1 }
   0xf   : > { %s4601_s17 = scalar_select %p3965_p6, 1, 0 }
  0x10   : > { %p472_p8 = scmp.lt.s32.totalorder %s3824_s24, 3 }
  0x11   : > { %4602 = sst [smem:[#allocation8_spill]] %s4601_s17 }
  0x12   : > { %p473_p9 = pnand %p3083_p7, %p472_p8 }
  0x13   : > { %v535_v0 = vld [vmem:[%s4568_s2] sm:$0xff] (!%p473_p9)  ;;  %v536_v1 = vld [vmem:[%s4568_s2 + $0x8] sm:$0xff] (!%p473_p9)  ;;  %vm554_vm0 = vcmask (!%p473_p9), 261120   ;;  %v3826_v2 = vmov (!%p473_p9), 0.0|0.0   ;;  %vm3827_vm2 = vmmov (!%p473_p9), 0   ;;  %v3828_v5 = vmov (!%p473_p9), 0.0  }
  0x14   : > { %476 = sbr.rel (%p473_p9) target bundleno = 5472 (0x1560), region = 84  ;;  %3556 = vmatprep.subr.bf16.mxu0 (!%p473_p9), %v3826_v2  ;;  %v3557_v3 = vpack.c.bf16 (!%p473_p9), %v536_v1, %v535_v0  ;;  %vm3980_vm1 = vmpackc.low (!%p473_p9), %vm554_vm0, %vm554_vm0  ;;  %3357 = vmatprep.mubr.msk.f32.mxu0 (!%p473_p9), %vm3827_vm2, %v3828_v5  ;;  %v537_v6 = vld [vmem:[%s4568_s2 + $0x10] sm:$0xff] (!%p473_p9)  ;;  %v538_v7 = vld [vmem:[%s4568_s2 + $0x18] sm:$0xff] (!%p473_p9)  ;;  %p524_p10 = scmp.lt.s32.totalorder (!%p473_p9), %s3944_s25, 1  ;;  %vm673_vm3 = vcmask (!%p473_p9), 64512   ;;  %v981_v33 = vlaneseq (!%p473_p9)  ;;  %vm1351_vm4 = vcmask (!%p473_p9), 130048  }
  0x15   : > { %3360 = vmatprep.subr.mxu1 (!%p473_p9), %v3828_v5  ;;  %3362 = vmatprep.mubr.msk.f32.mxu1 (!%p473_p9), %vm3827_vm2, %v3828_v5  ;;  %v3561_v8 = vpack.c.bf16 (!%p473_p9), %v538_v7, %v537_v6  ;;  %v539_v9 = vld [vmem:[%s4568_s2 + $0x20] sm:$0xff] (!%p473_p9)  ;;  %v540_v10 = vld [vmem:[%s4568_s2 + $0x28] sm:$0xff] (!%p473_p9)  ;;  %v541_v12 = vld [vmem:[%s4568_s2 + $0x30] sm:$0xff] (!%p473_p9)  ;;  %s4605_s27 = sld [smem:[#allocation9_spill]] (!%p473_p9)  ;;  %s4591_s18 = smov (!%p473_p9), 104   ;;  %vm1353_vm5 = vcmask (!%p473_p9), 195584  }
  0x16   : > { %3559 = vmatpush3.bf16.xpose.msk.msra.mxu0 (!%p473_p9), %vm3980_vm1, %v3557_v3  ;;  %v3565_v11 = vpack.c.bf16 (!%p473_p9), %v540_v10, %v539_v9  ;;  %v542_v13 = vld [vmem:[%s4568_s2 + $0x38] sm:$0xff] (!%p473_p9)  ;;  %v543_v15 = vld [vmem:[%s4568_s2 + $0x40] sm:$0xff] (!%p473_p9)  ;;  %v544_v16 = vld [vmem:[%s4568_s2 + $0x48] sm:$0xff] (!%p473_p9)  ;;  %s3832_s19 = smov (!%p473_p9), 112   ;;  %s4606_s1 = sld [smem:[#allocation10_spill]] (!%p473_p9)  ;;  %v982_v36 = vshrl.u32 (!%p473_p9), %v981_v33, 7 }
  0x17   : > { %3560 = vmatprep.subr.bf16.mxu0 (!%p473_p9), %v3826_v2  ;;  %v3569_v14 = vpack.c.bf16 (!%p473_p9), %v542_v13, %v541_v12  ;;  %v3573_v17 = vpack.c.bf16 (!%p473_p9), %v544_v16, %v543_v15  ;;  %v545_v18 = vld [vmem:[%s4568_s2 + $0x50] sm:$0xff] (!%p473_p9)  ;;  %v546_v19 = vld [vmem:[%s4568_s2 + $0x58] sm:$0xff] (!%p473_p9)  ;;  %v3086_v22 = vld [vmem:[%s4569_s3] ss:$0 sm:$0xff] (!%p473_p9)  ;;  %s4594_s28 = smov (!%p473_p9), 8   ;;  %s4593_s29 = smov (!%p473_p9), 16  }
  0x18   : > { %v3577_v20 = vpack.c.bf16 (!%p473_p9), %v546_v19, %v545_v18  ;;  %v983_v38 = vsub.s32 (!%p473_p9), 0, %v982_v36  ;;  %v1355_v36 = vld [vmem:[%s4570_s4] sm:$0xff] (!%p473_p9)  ;;  %vm1606_vm6 = vcmask (!%p473_p9), 523264   ;;  %s521_s20 = sand.u32 (!%p473_p9), 1, %s3816_s22  }
  0x19   : > { %vm4214_vm7 = vmpackc.low (!%p473_p9), %vm1606_vm6, %vm1606_vm6  ;;  %v3226_v4 = vld [vmem:[%s4581_s15] ss:$0 sm:$0xff] (!%p473_p9) }
  0x1b   : > { %s4036_s23 = scalar_select %p524_p10, %s3944_s25, 1 }
  0x1d   : > { %s3085_s30 = sshll.u32 %s4036_s23, 3  ;;  %s530_s26 = scalar_lea.vmem %s4606_s1, %s4036_s23 }
  0x1e   : > { %3563 = vmatpush3.bf16.xpose.msk.msra.mxu0 %vm3980_vm1, %v3561_v8  ;;  %s527_s17 = scalar_lea.vmem %s4605_s27, %s3085_s30  ;;  %s3830_s27 = smov 120   ;;  %v532_v34 = vld [vmem:[%s530_s26] sm:$0x1] }
  0x1f   : > { %3564 = vmatprep.subr.bf16.mxu0 %v3826_v2  ;;  %v4045_v21 = vld [vmem:[%s527_s17] sm:$0xff]  ;;  %s4589_s17 = smov 96   ;;  %v533_v35 = vsub.f32 1.0, %v532_v34  ;;  %s4587_s23 = smov 64  }
  0x21   : > { %v534_v37 = vmul.f32 -1e+09, %v533_v35 }
  0x23   : > { %v4100_v39 = vrot.slane %v534_v37, %v983_v38  ;;  %v1356_v37 = vld [vmem:[%s4570_s4 + $0x8] sm:$0xff] }
  0x24   : > { %v3581_v38 = vpack.c.bf16 %v1356_v37, %v1355_v36 }
  0x26   : > { %3567 = vmatpush3.bf16.xpose.msk.msra.mxu0 %vm3980_vm1, %v3565_v11 }
  0x27   : > { %3568 = vmatprep.subr.bf16.mxu0 %v3826_v2 }
  0x2e   : > { %3571 = vmatpush3.bf16.xpose.msk.msra.mxu0 %vm3980_vm1, %v3569_v14 }
  0x2f   : > { %3572 = vmatprep.subr.bf16.mxu0 %v3826_v2 }
  0x36   : > { %3575 = vmatpush3.bf16.xpose.msk.msra.mxu0 %vm3980_vm1, %v3573_v17 }
  0x37   : > { %3576 = vmatprep.subr.bf16.mxu0 %v3826_v2 }
  0x3e   : > { %3579 = vmatpush3.bf16.xpose.msk.msra.mxu0 %vm3980_vm1, %v3577_v20 }
  0x3f   : > { %3588 = vmatprep.subr.bf16.mxu0 %v3826_v2 }
  0x45   : > { %3358 = vmatmul.mubr.msk.f32.vlgmr.msra.gmra.mrb[0].mxu0 %vm554_vm0, %v4045_v21 }
  0x46   : > { %3427 = vmatprep.mubr.msk.f32.mxu0 %vm3827_vm2, %v3828_v5 }
 0x118   : > { %v660_v23 = vpop.f32.mrb[0].mxu0 }
 0x119   : > { %v4054_v24 = vadd.f32 %v3086_v22, %v660_v23  ;;  %v3359_v25 = vpop.f32.mrb[1].mxu0 }
 0x11b   : > { %669 = vrot.lane.b32.xlu1 %v4054_v24, %s4591_s18  ;;  %665 = vrot.lane.b32.xlu0 %v4054_v24, %s3830_s27  ;;  %s4609_s18 = smov 104  }
 0x11f   : > { %671 = vrot.lane.b32.xlu1 %v4054_v24, %s4589_s17  ;;  %667 = vrot.lane.b32.xlu0 %v4054_v24, %s3832_s19 }
 0x18d   : > { %v4064_v26 = vpop.permute.xlu1 %669  ;;  %v666_v27 = vpop.permute.xlu0 %665 }
 0x18e   : > { %748 = vrot.lane.b32.xlu0 %v666_v27, %s4589_s17 }
 0x191   : > { %v672_v28 = vpop.permute.xlu1 %671  ;;  %v4067_v29 = vpop.permute.xlu0 %667 }
 0x192   : > { %3361 = vmatpush3.xpose.msk.msra.mxu1 %vm673_vm3, %v672_v28  ;;  %900 = vrot.lane.b32.xlu0 %v4064_v26, %s4589_s17 }
 0x193   : > { %824 = vrot.lane.b32.xlu1 %v4067_v29, %s4589_s17  ;;  %3365 = vmatprep.subr.mxu1 %v3828_v5  ;;  %s4610_s17 = smov 96  }
 0x195   : > { %3363 = vmatmul.mubr.msk.f32.vlgmr.msra.gmra.mrb[0].mxu1 %vm673_vm3, %v4054_v24 }
 0x196   : > { %3367 = vmatprep.mubr.msk.f32.mxu1 %vm3827_vm2, %v3828_v5 }
 0x200   : > { %v749_v30 = vpop.permute.xlu0 %748 }
 0x201   : > { %3366 = vmatpush3.xpose.msk.msra.mxu1 %vm673_vm3, %v749_v30 }
 0x202   : > { %3370 = vmatprep.subr.mxu1 %v3828_v5 }
 0x204   : > { %3368 = vmatmul.mubr.msk.f32.vlgmr.msra.gmra.mrb[2].mxu1 %vm673_vm3, %v666_v27  ;;  %v901_v32 = vpop.permute.xlu0 %900 }
 0x205   : > { %v825_v31 = vpop.permute.xlu1 %824  ;;  %3372 = vmatprep.mubr.msk.f32.mxu1 %vm3827_vm2, %v3828_v5 }
 0x206   : > { %3371 = vmatpush3.xpose.msk.msra.mxu1 %vm673_vm3, %v825_v31 }
 0x207   : > { %3375 = vmatprep.subr.mxu1 %v3828_v5 }
 0x209   : > { %3373 = vmatmul.mubr.msk.f32.vlgmr.msra.gmra.mrb[4].mxu1 %vm673_vm3, %v4067_v29 }
 0x20a   : > { %3376 = vmatpush3.xpose.msk.msra.mxu1 %vm673_vm3, %v901_v32  ;;  %3377 = vmatprep.mubr.msk.f32.mxu1 %vm3827_vm2, %v3828_v5 }
 0x20b   : > { %3380 = vmatprep.subr.mxu1 %v3828_v5 }
 0x20d   : > { %3378 = vmatmul.mubr.msk.f32.vlgmr.msra.gmra.mrb[6].mxu1 %vm673_vm3, %v4064_v26 }
 0x20e   : > { %3382 = vmatprep.mubr.msk.f32.mxu1 %vm3827_vm2, %v3828_v5 }
 0x268   : > { %v744_v40 = vpop.f32.mrb[0].mxu1 }
 0x269   : > { %v976_v41 = vmul.f32 0.35355338, %v744_v40  ;;  %v3364_v42 = vpop.f32.mrb[1].mxu1 }
 0x26a   : > { %v1357_v42 = vld [vmem:[%s4570_s4 + $0x10] sm:$0xff] }
 0x26b   : > { %v986_v43 = vadd.f32 %v4100_v39, %v976_v41 }
 0x26d   : > { %v990_v44 = vsel %vm673_vm3, %v986_v43, -inf }
 0x26e   : > { %991 = vmax.xlane.f32.xlu1 %v990_v44 }
 0x2d7   : > { %v820_v45 = vpop.f32.mrb[2].mxu1 }
 0x2d8   : > { %v977_v46 = vmul.f32 0.35355338, %v820_v45  ;;  %v3369_v47 = vpop.f32.mrb[3].mxu1 }
 0x2da   : > { %v987_v48 = vadd.f32 %v4100_v39, %v977_v46 }
 0x2dc   : > { %v896_v49 = vpop.f32.mrb[4].mxu1  ;;  %v993_v50 = vsel %vm673_vm3, %v987_v48, -inf }
 0x2dd   : > { %v978_v51 = vmul.f32 0.35355338, %v896_v49  ;;  %v3374_v52 = vpop.f32.mrb[5].mxu1  ;;  %994 = vmax.xlane.f32.xlu0 %v993_v50 }
 0x2df   : > { %v988_v53 = vadd.f32 %v4100_v39, %v978_v51 }
 0x2e0   : > { %v972_v54 = vpop.f32.mrb[6].mxu1 }
 0x2e1   : > { %v979_v55 = vmul.f32 0.35355338, %v972_v54  ;;  %v3379_v56 = vpop.f32.mrb[7].mxu1  ;;  %v996_v57 = vsel %vm673_vm3, %v988_v53, -inf }
 0x2e2   : > { %997 = vmax.xlane.f32.xlu0 %v996_v57  ;;  %v3112_v57 = vld [vmem:[%s4571_s5] ss:$0 sm:$0xff] }
 0x2e3   : > { %v989_v58 = vadd.f32 %v4100_v39, %v979_v55 }
 0x2e5   : > { %v999_v59 = vsel %vm673_vm3, %v989_v58, -inf }
 0x2e6   : > { %1000 = vmax.xlane.f32.xlu1 %v999_v59 }
 0x2f7   : > { %1110 = vrot.lane.b32.xlu1 %v666_v27, %s4587_s23 }
 0x2fb   : > { %v992_v60 = vpop.xlane.xlu1 %991 }
 0x2fc   : > { %v1002_v61 = vsub.f32 %v986_v43, %v992_v60  ;;  %v1358_v43 = vld [vmem:[%s4570_s4 + $0x18] sm:$0xff] }
 0x2fd   : > { %v3585_v44 = vpack.c.bf16 %v1358_v43, %v1357_v42 }
 0x2fe   : > { %v1006_v62 = vmul.f32 1.442695, %v1002_v61 }
 0x300   : > { %3722 = vpow2.f32 %v1006_v62 }
 0x30a   : > { %v3723_v63 = vpop.eup %3722 }
 0x30b   : > { %v1014_v0 = vsel %vm673_vm3, %v3723_v63, 0.0 }
 0x30c   : > { %1015 = vadd.xlane.f32.xlu0 %v1014_v0  ;;  %v1483_v0 = vld [vmem:[%s4574_s8 + $0x8] sm:$0xff] }
 0x322   : > { %1034 = vrot.lane.b32.xlu0 %v4054_v24, %s4587_s23 }
 0x36a   : > { %v995_v1 = vpop.xlane.xlu0 %994 }
 0x36b   : > { %v1003_v3 = vsub.f32 %v987_v48, %v995_v1 }
 0x36d   : > { %v1008_v6 = vmul.f32 1.442695, %v1003_v3  ;;  %v1485_v3 = vld [vmem:[%s4574_s8 + $0x18] sm:$0xff] }
 0x36f   : > { %3724 = vpow2.f32 %v1008_v6  ;;  %v998_v7 = vpop.xlane.xlu0 %997 }
 0x370   : > { %v1004_v8 = vsub.f32 %v988_v53, %v998_v7 }
 0x372   : > { %v1010_v9 = vmul.f32 1.442695, %v1004_v8 }
 0x373   : > { %v1001_v10 = vpop.xlane.xlu1 %1000 }
 0x374   : > { %3726 = vpow2.f32 %v1010_v9  ;;  %v1005_v11 = vsub.f32 %v989_v58, %v1001_v10 }
 0x376   : > { %v1012_v12 = vmul.f32 1.442695, %v1005_v11 }
 0x377   : > { %v1111_v24 = vpop.permute.xlu1 %1110 }
 0x378   : > { %3728 = vpow2.f32 %v1012_v12  ;;  %v1486_v12 = vld [vmem:[%s4574_s8 + $0x20] sm:$0xff] }
 0x379   : > { %v3725_v13 = vpop.eup %3724 }
 0x37a   : > { %v1017_v14 = vsel %vm673_vm3, %v3725_v13, 0.0 }
 0x37b   : > { %1018 = vadd.xlane.f32.xlu1 %v1017_v14 }
 0x37e   : > { %v3727_v15 = vpop.eup %3726 }
 0x37f   : > { %v1020_v16 = vsel %vm673_vm3, %v3727_v15, 0.0 }
 0x380   : > { %1021 = vadd.xlane.f32.xlu0 %v1020_v16  ;;  %v1489_v16 = vld [vmem:[%s4574_s8 + $0x38] sm:$0xff] }
 0x382   : > { %v3729_v17 = vpop.eup %3728 }
 0x383   : > { %v1023_v18 = vsel %vm673_vm3, %v3729_v17, 0.0 }
 0x384   : > { %1024 = vadd.xlane.f32.xlu1 %v1023_v18  ;;  %v1595_v18 = vld [vmem:[%s4576_s10] sm:$0xff] }
 0x395   : > { %1186 = vrot.lane.b32.xlu1 %v4067_v29, %s4587_s23 }
 0x396   : > { %1262 = vrot.lane.b32.xlu0 %v4064_v26, %s4587_s23  ;;  %s4592_s23 = smov 24  }
 0x399   : > { %v1016_v19 = vpop.xlane.xlu0 %1015 }
 0x39a   : > { %3730 = vrcp.f32 %v1016_v19  ;;  %v1596_v19 = vld [vmem:[%s4576_s10 + $0x8] sm:$0xff] }
 0x39d   : > { %v1035_v20 = vpop.permute.xlu0 %1034 }
 0x39e   : > { %3381 = vmatpush3.msra.mxu1 %v1035_v20  ;;  %v3605_v20 = vpack.c.bf16 %v1596_v19, %v1595_v18 }
 0x39f   : > { %3385 = vmatprep.subr.mxu1 %v3828_v5 }
 0x3a4   : > { %v3731_v22 = vpop.eup %3730 }
 0x3a5   : > { %v1030_v23 = vmul.f32 %v3731_v22, %v3723_v63  ;;  %v1482_v63 = vld [vmem:[%s4574_s8] sm:$0xff] }
 0x3a6   : > { %v3589_v1 = vpack.c.bf16 %v1483_v0, %v1482_v63  ;;  %v3146_v0 = vld [vmem:[%s4568_s2 + $0xa0] sm:$0xff] }
 0x3a7   : > { %3383 = vmatmul.mubr.msk.f32.vlgmr.msra.gmra.mrb[8].mxu1 %vm673_vm3, %v1030_v23  ;;  %v1597_v23 = vld [vmem:[%s4576_s10 + $0x10] sm:$0xff] }
 0x3a8   : > { %3386 = vmatpush3.msra.mxu1 %v1111_v24  ;;  %3387 = vmatprep.mubr.msk.f32.mxu1 %vm3827_vm2, %v3828_v5  ;;  %v1598_v24 = vld [vmem:[%s4576_s10 + $0x18] sm:$0xff] }
 0x3a9   : > { %3390 = vmatprep.subr.mxu1 %v3828_v5  ;;  %3591 = vmatpush3.bf16.xpose.msk.msra.mxu0 %vm3980_vm1, %v3589_v1  ;;  %v3147_v1 = vld [vmem:[%s4568_s2 + $0xa8] sm:$0xff] }
 0x3aa   : > { %3592 = vmatprep.subr.bf16.mxu0 %v3826_v2 }
 0x408   : > { %v1019_v25 = vpop.xlane.xlu1 %1018 }
 0x409   : > { %3732 = vrcp.f32 %v1019_v25  ;;  %v3609_v25 = vpack.c.bf16 %v1598_v24, %v1597_v23 }
 0x40d   : > { %v1022_v26 = vpop.xlane.xlu0 %1021 }
 0x40e   : > { %3734 = vrcp.f32 %v1022_v26 }
 0x411   : > { %v1025_v27 = vpop.xlane.xlu1 %1024  ;;  %v1263_v33 = vpop.permute.xlu0 %1262 }
 0x412   : > { %3736 = vrcp.f32 %v1025_v27 }
 0x413   : > { %v3733_v28 = vpop.eup %3732 }
 0x414   : > { %v1031_v29 = vmul.f32 %v3733_v28, %v3725_v13  ;;  %v1487_v13 = vld [vmem:[%s4574_s8 + $0x28] sm:$0xff] }
 0x415   : > { %v1187_v30 = vpop.permute.xlu1 %1186  ;;  %v3597_v14 = vpack.c.bf16 %v1487_v13, %v1486_v12  ;;  %v3136_v12 = vld [vmem:[%s4578_s12] ss:$0 sm:$0xff] }
 0x416   : > { %3388 = vmatmul.mubr.msk.f32.vlgmr.msra.gmra.mrb[10].mxu1 %vm673_vm3, %v1031_v29 }
 0x417   : > { %3391 = vmatpush3.msra.mxu1 %v1187_v30  ;;  %3392 = vmatprep.mubr.msk.f32.mxu1 %vm3827_vm2, %v3828_v5  ;;  %v3118_v30 = vld [vmem:[%s4572_s6] ss:$0 sm:$0xff] }
 0x418   : > { %v3735_v31 = vpop.eup %3734  ;;  %3395 = vmatprep.subr.mxu1 %v3828_v5 }
 0x419   : > { %v1032_v32 = vmul.f32 %v3735_v31, %v3727_v15  ;;  %v1488_v15 = vld [vmem:[%s4574_s8 + $0x30] sm:$0xff] }
 0x41b   : > { %3393 = vmatmul.mubr.msk.f32.vlgmr.msra.gmra.mrb[12].mxu1 %vm673_vm3, %v1032_v32  ;;  %v3119_v32 = vld [vmem:[%s4573_s7] ss:$0 sm:$0xff] }
 0x41c   : > { %v3737_v34 = vpop.eup %3736  ;;  %3396 = vmatpush3.msra.mxu1 %v1263_v33  ;;  %3397 = vmatprep.mubr.msk.f32.mxu1 %vm3827_vm2, %v3828_v5 }
 0x41d   : > { %v1033_v35 = vmul.f32 %v3737_v34, %v3729_v17  ;;  %3580 = vmatprep.subr.bf16.mxu1 %v3826_v2  ;;  %v3601_v17 = vpack.c.bf16 %v1489_v16, %v1488_v15 }
 0x41f   : > { %3398 = vmatmul.mubr.msk.f32.vlgmr.msra.gmra.mrb[14].mxu1 %vm673_vm3, %v1033_v35  ;;  %v3120_v35 = vld [vmem:[%s4575_s9] ss:$0 sm:$0xff] }
 0x420   : > { %3408 = vmatprep.mubr.msk.f32.mxu1 %vm3827_vm2, %v3828_v5 }
 0x423   : > { %3583 = vmatpush3.bf16.xpose.msk.msra.mxu1 %vm3980_vm1, %v3581_v38 }
 0x424   : > { %3584 = vmatprep.subr.bf16.mxu1 %v3826_v2 }
 0x42b   : > { %3587 = vmatpush3.bf16.xpose.msk.msra.mxu1 %vm3980_vm1, %v3585_v44 }
 0x42c   : > { %3604 = vmatprep.subr.bf16.mxu1 %v3826_v2 }
 0x47a   : > { %v1106_v40 = vpop.f32.mrb[8].mxu1 }
 0x47b   : > { %v3384_v41 = vpop.f32.mrb[9].mxu1 }
 0x47c   : > { %v3130_v41 = vld [vmem:[%s4577_s11] ss:$0 sm:$0xff] }
 0x4e9   : > { %v1182_v45 = vpop.f32.mrb[10].mxu1 }
 0x4ea   : > { %1339 = vrot.lane.b32.xlu1 %v1182_v45, %s4594_s28  ;;  %v3389_v46 = vpop.f32.mrb[11].mxu1  ;;  %s3084_s28 = sshll.u32 %s521_s20, 3 }
 0x4ee   : > { %v1258_v47 = vpop.f32.mrb[12].mxu1 }
 0x4ef   : > { %1343 = vrot.lane.b32.xlu0 %v1258_v47, %s4593_s29  ;;  %v3394_v48 = vpop.f32.mrb[13].mxu1  ;;  %v3138_v47 = vld [vmem:[%s4568_s2 + $0x60] sm:$0xff]  ;;  %s2999_s29 = scalar_lea.sflag [#allocation3], %s521_s20 }
 0x4f0   : > { %v3139_v48 = vld [vmem:[%s4568_s2 + $0x68] sm:$0xff] }
 0x4f2   : > { %v1334_v49 = vpop.f32.mrb[14].mxu1 }
 0x4f3   : > { %1347 = vrot.lane.b32.xlu1 %v1334_v49, %s4592_s23  ;;  %v3399_v50 = vpop.f32.mrb[15].mxu1  ;;  %v3613_v49 = vpack.c.bf16 %v3139_v48, %v3138_v47 }
 0x4f4   : > { %v3140_v50 = vld [vmem:[%s4568_s2 + $0x70] sm:$0xff] }
 0x55c   : > { %v1340_v51 = vpop.permute.xlu1 %1339 }
 0x55d   : > { %v1350_v53 = vsel %vm673_vm3, %v1106_v40, %v1340_v51  ;;  %v3141_v51 = vld [vmem:[%s4568_s2 + $0x78] sm:$0xff] }
 0x561   : > { %v1344_v52 = vpop.permute.xlu0 %1343 }
 0x562   : > { %v1352_v54 = vsel %vm1351_vm4, %v1350_v53, %v1344_v52  ;;  %v3617_v52 = vpack.c.bf16 %v3141_v51, %v3140_v50  ;;  %v3142_v53 = vld [vmem:[%s4568_s2 + $0x80] sm:$0xff] }
 0x565   : > { %v1348_v55 = vpop.permute.xlu1 %1347 }
 0x566   : > { %v1354_v56 = vsel %vm1353_vm5, %v1352_v54, %v1348_v55  ;;  %v3143_v54 = vld [vmem:[%s4568_s2 + $0x88] sm:$0xff] }
 0x567   : > { %3409 = vmatmul.mubr.msk.f32.vlgmr.msra.gmra.mrb[16].mxu1 %vm554_vm0, %v1354_v56  ;;  %v3621_v55 = vpack.c.bf16 %v3143_v54, %v3142_v53  ;;  %v3144_v56 = vld [vmem:[%s4568_s2 + $0x90] sm:$0xff] }
 0x568   : > { %3438 = vmatprep.mubr.msk.f32.mxu1 %vm3827_vm2, %v3828_v5  ;;  %3607 = vmatpush3.bf16.xpose.msk.msra.mxu1 %vm4214_vm7, %v3605_v20 }
 0x569   : > { %3608 = vmatprep.subr.bf16.mxu1 %v3826_v2 }
 0x570   : > { %3611 = vmatpush3.bf16.xpose.msk.msra.mxu1 %vm4214_vm7, %v3609_v25 }
 0x571   : > { %3612 = vmatprep.subr.bf16.mxu1 %v3826_v2 }
 0x63a   : > { %v1447_v58 = vpop.f32.mrb[16].mxu1 }
 0x63b   : > { %v1448_v59 = vadd.f32 %v3112_v57, %v1447_v58  ;;  %v3410_v60 = vpop.f32.mrb[17].mxu1  ;;  %v3145_v57 = vld [vmem:[%s4568_s2 + $0x98] sm:$0xff] }
 0x63c   : > { %v3625_v58 = vpack.c.bf16 %v3145_v57, %v3144_v56 }
 0x63d   : > { %v1451_v61 = vadd.f32 %v1448_v59, %v4045_v21  ;;  %v1484_v21 = vld [vmem:[%s4574_s8 + $0x10] sm:$0xff] }
 0x63e   : > { %v3593_v6 = vpack.c.bf16 %v1485_v3, %v1484_v21  ;;  %v3629_v21 = vpack.c.bf16 %v3147_v1, %v3146_v0  ;;  %v3148_v3 = vld [vmem:[%s4568_s2 + $0xb0] sm:$0xff] }
 0x63f   : > { %v1454_v62 = vsel %vm554_vm0, %v1451_v61, 0.0 }
 0x640   : > { %1455 = vadd.xlane.f32.xlu0 %v1454_v62  ;;  %3595 = vmatpush3.bf16.xpose.msk.msra.mxu0 %vm3980_vm1, %v3593_v6  ;;  %v3149_v6 = vld [vmem:[%s4568_s2 + $0xb8] sm:$0xff] }
 0x641   : > { %3596 = vmatprep.subr.bf16.mxu0 %v3826_v2 }
 0x648   : > { %3599 = vmatpush3.bf16.xpose.msk.msra.mxu0 %vm3980_vm1, %v3597_v14  ;;  %v3137_v14 = vld [vmem:[%s4579_s13] ss:$0 sm:$0xff] }
 0x649   : > { %3600 = vmatprep.subr.bf16.mxu0 %v3826_v2 }
 0x650   : > { %3603 = vmatpush3.bf16.xpose.msk.msra.mxu0 %vm3980_vm1, %v3601_v17  ;;  %v3151_v17 = vld [vmem:[%s4569_s3 + $0x1] ss:$0 sm:$0xff] }
 0x651   : > { %3473 = vmatprep.subr.mxu0 %v3828_v5 }
 0x6cd   : > { %v1456_v7 = vpop.xlane.xlu0 %1455 }
 0x6ce   : > { %v1458_v8 = vmul.f32 0.03125, %v1456_v7  ;;  %v3633_v7 = vpack.c.bf16 %v3149_v6, %v3148_v3 }
 0x6d0   : > { %v1459_v9 = vsub.f32 %v1451_v61, %v1458_v8 }
 0x6d2   : > { %v1460_v10 = vmul.f32 %v1459_v9, %v1459_v9 }
 0x6d4   : > { %v1461_v11 = vsel %vm554_vm0, %v1460_v10, 0.0 }
 0x6d5   : > { %1462 = vadd.xlane.f32.xlu1 %v1461_v11 }
 0x762   : > { %v1463_v26 = vpop.xlane.xlu1 %1462 }
 0x763   : > { %v1464_v27 = vmul.f32 0.03125, %v1463_v26 }
 0x765   : > { %v1465_v28 = vadd.f32 1e-05, %v1464_v27 }
 0x767   : > { %3738 = vrsqrt.f32 %v1465_v28 }
 0x771   : > { %v3739_v29 = vpop.eup %3738 }
 0x772   : > { %v1467_v31 = vmul.f32 %v3739_v29, %v1459_v9 }
 0x774   : > { %v1474_v33 = vmul.f32 %v3118_v30, %v1467_v31 }
 0x776   : > { %v1481_v34 = vadd.f32 %v3119_v32, %v1474_v33 }
 0x778   : > { %3428 = vmatmul.mubr.msk.f32.vlgmr.msra.gmra.mrb[2].mxu0 %vm554_vm0, %v1481_v34 }
 0x779   : > { %3475 = vmatprep.mubr.msk.f32.mxu0 %vm3827_vm2, %v3828_v5 }
 0x84b   : > { %v1590_v36 = vpop.f32.mrb[2].mxu0 }
 0x84c   : > { %v1591_v37 = vadd.f32 %v3120_v35, %v1590_v36  ;;  %v3429_v38 = vpop.f32.mrb[3].mxu0 }
 0x84e   : > { %v1594_v40 = vmax.f32 %v1591_v37, 0.0 }
 0x850   : > { %3439 = vmatmul.mubr.msk.f32.vlgmr.msra.gmra.mrb[18].mxu1 %vm1606_vm6, %v1594_v40 }
 0x851   : > { %3465 = vmatprep.mubr.msk.f32.mxu1 %vm3827_vm2, %v3828_v5  ;;  %3615 = vmatpush3.bf16.xpose.msk.msra.mxu1 %vm3980_vm1, %v3613_v49 }
 0x852   : > { %3616 = vmatprep.subr.bf16.mxu1 %v3826_v2 }
 0x859   : > { %3619 = vmatpush3.bf16.xpose.msk.msra.mxu1 %vm3980_vm1, %v3617_v52 }
 0x85a   : > { %3620 = vmatprep.subr.bf16.mxu1 %v3826_v2 }
 0x861   : > { %3623 = vmatpush3.bf16.xpose.msk.msra.mxu1 %vm3980_vm1, %v3621_v55 }
 0x862   : > { %3624 = vmatprep.subr.bf16.mxu1 %v3826_v2 }
 0x869   : > { %3627 = vmatpush3.bf16.xpose.msk.msra.mxu1 %vm3980_vm1, %v3625_v58 }
 0x86a   : > { %3628 = vmatprep.subr.bf16.mxu1 %v3826_v2 }
 0x871   : > { %3631 = vmatpush3.bf16.xpose.msk.msra.mxu1 %vm3980_vm1, %v3629_v21 }
 0x872   : > { %3632 = vmatprep.subr.bf16.mxu1 %v3826_v2 }
 0x879   : > { %3635 = vmatpush3.bf16.xpose.msk.msra.mxu1 %vm3980_vm1, %v3633_v7 }
 0x87a   : > { %3468 = vmatprep.subr.mxu1 %v3828_v5 }
 0x923   : > { %v1688_v42 = vpop.f32.mrb[18].mxu1 }
 0x924   : > { %v1689_v43 = vadd.f32 %v3130_v41, %v1688_v42  ;;  %v3440_v44 = vpop.f32.mrb[19].mxu1 }
 0x926   : > { %v1692_v45 = vadd.f32 %v1689_v43, %v1481_v34 }
 0x928   : > { %v1695_v46 = vsel %vm554_vm0, %v1692_v45, 0.0 }
 0x929   : > { %1696 = vadd.xlane.f32.xlu0 %v1695_v46 }
 0x9b6   : > { %v1697_v59 = vpop.xlane.xlu0 %1696 }
 0x9b7   : > { %v1698_v60 = vmul.f32 0.03125, %v1697_v59 }
 0x9b9   : > { %v1699_v61 = vsub.f32 %v1692_v45, %v1698_v60 }
 0x9bb   : > { %v1700_v62 = vmul.f32 %v1699_v61, %v1699_v61 }
 0x9bd   : > { %v1701_v63 = vsel %vm554_vm0, %v1700_v62, 0.0 }
 0x9be   : > { %1702 = vadd.xlane.f32.xlu0 %v1701_v63 }
 0xa4b   : > { %v1703_v8 = vpop.xlane.xlu0 %1702 }
 0xa4c   : > { %v1704_v9 = vmul.f32 0.03125, %v1703_v8 }
 0xa4e   : > { %v1705_v10 = vadd.f32 1e-05, %v1704_v9 }
 0xa50   : > { %3740 = vrsqrt.f32 %v1705_v10 }
 0xa5a   : > { %v3741_v11 = vpop.eup %3740 }
 0xa5b   : > { %v1707_v13 = vmul.f32 %v3741_v11, %v1699_v61 }
 0xa5d   : > { %v1714_v15 = vmul.f32 %v3136_v12, %v1707_v13 }
 0xa5f   : > { %v4310_v16 = vadd.f32 %v3137_v14, %v1714_v15 }
 0xa61   : > { %3466 = vmatmul.mubr.msk.f32.vlgmr.msra.gmra.mrb[20].mxu1 %vm554_vm0, %v4310_v16 }
 0xa62   : > { %3470 = vmatprep.mubr.msk.f32.mxu1 %vm3827_vm2, %v3828_v5 }
 0xb34   : > { %v1848_v18 = vpop.f32.mrb[20].mxu1 }
 0xb35   : > { %v4319_v19 = vadd.f32 %v3151_v17, %v1848_v18  ;;  %v3467_v20 = vpop.f32.mrb[21].mxu1 }
 0xb37   : > { %1855 = vrot.lane.b32.xlu0 %v4319_v19, %s3832_s19  ;;  %1853 = vrot.lane.b32.xlu1 %v4319_v19, %s3830_s27  ;;  %s4611_s27 = smov 64   ;;  %s4614_s19 = smov 24  }
 0xb3b   : > { %1857 = vrot.lane.b32.xlu1 %v4319_v19, %s4609_s18  ;;  %s3231_s18 = sshll.u32 %s3944_s25, 7  ;;  %s3837_s25 = smov [#allocation2]  }
 0xb3c   : > { %s4523_s30 = scalar_lea.hbm %s4582_s16, %s3231_s18 }
 0xb3f   : > { %1859 = vrot.lane.b32.xlu1 %v4319_v19, %s4610_s17 }
 0xba9   : > { %v4329_v23 = vpop.permute.xlu0 %1855  ;;  %v1854_v24 = vpop.permute.xlu1 %1853 }
 0xbaa   : > { %2011 = vrot.lane.b32.xlu1 %v4329_v23, %s4610_s17  ;;  %1935 = vrot.lane.b32.xlu0 %v1854_v24, %s4610_s17 }
 0xbad   : > { %v4334_v25 = vpop.permute.xlu1 %1857 }
 0xbae   : > { %2087 = vrot.lane.b32.xlu0 %v4334_v25, %s4610_s17  ;;  %s4612_s17 = smov 8  }
 0xbb1   : > { %v1860_v26 = vpop.permute.xlu1 %1859 }
 0xbb2   : > { %3469 = vmatpush3.xpose.msk.msra.mxu1 %vm673_vm3, %v1860_v26 }
 0xbb3   : > { %3644 = vmatprep.subr.bf16.mxu1 %v3826_v2 }
 0xbb5   : > { %3471 = vmatmul.mubr.msk.f32.vlgmr.msra.gmra.mrb[22].mxu1 %vm673_vm3, %v4319_v19 }
 0xbb6   : > { %3535 = vmatprep.mubr.msk.f32.mxu1 %vm3827_vm2, %v3828_v5 }
 0xc1c   : > { %v1936_v27 = vpop.permute.xlu0 %1935  ;;  %v2012_v28 = vpop.permute.xlu1 %2011 }
 0xc1d   : > { %3474 = vmatpush3.xpose.msk.msra.mxu0 %vm673_vm3, %v1936_v27  ;;  %v3177_v27 = vld [vmem:[%s4570_s4 + $0x20] sm:$0xff] }
 0xc1e   : > { %3478 = vmatprep.subr.mxu0 %v3828_v5 }
 0xc20   : > { %3476 = vmatmul.mubr.msk.f32.vlgmr.msra.gmra.mrb[4].mxu0 %vm673_vm3, %v1854_v24  ;;  %v2088_v29 = vpop.permute.xlu0 %2087 }
 0xc21   : > { %3479 = vmatpush3.xpose.msk.msra.mxu0 %vm673_vm3, %v2012_v28  ;;  %3480 = vmatprep.mubr.msk.f32.mxu0 %vm3827_vm2, %v3828_v5  ;;  %v3178_v28 = vld [vmem:[%s4570_s4 + $0x28] sm:$0xff] }
 0xc22   : > { %3483 = vmatprep.subr.mxu0 %v3828_v5 }
 0xc24   : > { %3481 = vmatmul.mubr.msk.f32.vlgmr.msra.gmra.mrb[6].mxu0 %vm673_vm3, %v4329_v23 }
 0xc25   : > { %3484 = vmatpush3.xpose.msk.msra.mxu0 %vm673_vm3, %v2088_v29  ;;  %3485 = vmatprep.mubr.msk.f32.mxu0 %vm3827_vm2, %v3828_v5  ;;  %v3637_v29 = vpack.c.bf16 %v3178_v28, %v3177_v27  ;;  %v3216_v28 = vld [vmem:[%s4577_s11 + $0x1] ss:$0 sm:$0xff] }
 0xc26   : > { %3488 = vmatprep.subr.mxu0 %v3828_v5 }
 0xc28   : > { %3486 = vmatmul.mubr.msk.f32.vlgmr.msra.gmra.mrb[8].mxu0 %vm673_vm3, %v4334_v25 }
 0xc29   : > { %3490 = vmatprep.mubr.msk.f32.mxu0 %vm3827_vm2, %v3828_v5 }
 0xc88   : > { %v1931_v30 = vpop.f32.mrb[22].mxu1 }
 0xc89   : > { %v2163_v31 = vmul.f32 0.35355338, %v1931_v30  ;;  %v3472_v32 = vpop.f32.mrb[23].mxu1 }
 0xc8a   : > { %v3179_v32 = vld [vmem:[%s4570_s4 + $0x30] sm:$0xff] }
 0xc8b   : > { %v2167_v33 = vadd.f32 %v2163_v31, %v4100_v39 }
 0xc8d   : > { %v2171_v34 = vsel %vm673_vm3, %v2167_v33, -inf }
 0xc8e   : > { %2172 = vmax.xlane.f32.xlu1 %v2171_v34 }
 0xcf3   : > { %v2007_v35 = vpop.f32.mrb[4].mxu0 }
 0xcf4   : > { %v2164_v36 = vmul.f32 0.35355338, %v2007_v35  ;;  %v3477_v37 = vpop.f32.mrb[5].mxu0 }
 0xcf6   : > { %v2168_v38 = vadd.f32 %v2164_v36, %v4100_v39 }
 0xcf7   : > { %v2083_v40 = vpop.f32.mrb[6].mxu0 }
 0xcf8   : > { %v2165_v41 = vmul.f32 0.35355338, %v2083_v40  ;;  %v3482_v42 = vpop.f32.mrb[7].mxu0  ;;  %v2174_v43 = vsel %vm673_vm3, %v2168_v38, -inf }
 0xcf9   : > { %2175 = vmax.xlane.f32.xlu0 %v2174_v43 }
 0xcfa   : > { %v2169_v44 = vadd.f32 %v2165_v41, %v4100_v39 }
 0xcfb   : > { %v2159_v45 = vpop.f32.mrb[8].mxu0 }
 0xcfc   : > { %v2166_v46 = vmul.f32 0.35355338, %v2159_v45  ;;  %v3487_v47 = vpop.f32.mrb[9].mxu0  ;;  %v2177_v48 = vsel %vm673_vm3, %v2169_v44, -inf }
 0xcfd   : > { %2178 = vmax.xlane.f32.xlu0 %v2177_v48  ;;  %v3182_v48 = vld [vmem:[%s4571_s5 + $0x1] ss:$0 sm:$0xff] }
 0xcfe   : > { %v2170_v49 = vadd.f32 %v2166_v46, %v4100_v39 }
 0xd00   : > { %v2180_v50 = vsel %vm673_vm3, %v2170_v49, -inf }
 0xd01   : > { %2181 = vmax.xlane.f32.xlu1 %v2180_v50 }
 0xd12   : > { %2291 = vrot.lane.b32.xlu1 %v1854_v24, %s4611_s27 }
 0xd1b   : > { %v2173_v51 = vpop.xlane.xlu1 %2172 }
 0xd1c   : > { %v2183_v52 = vsub.f32 %v2167_v33, %v2173_v51  ;;  %v3180_v33 = vld [vmem:[%s4570_s4 + $0x38] sm:$0xff] }
 0xd1d   : > { %v3641_v34 = vpack.c.bf16 %v3180_v33, %v3179_v32 }
 0xd1e   : > { %v2187_v53 = vmul.f32 1.442695, %v2183_v52 }
 0xd20   : > { %3742 = vpow2.f32 %v2187_v53 }
 0xd2a   : > { %v3743_v54 = vpop.eup %3742 }
 0xd2b   : > { %v2195_v55 = vsel %vm673_vm3, %v3743_v54, 0.0 }
 0xd2c   : > { %2196 = vadd.xlane.f32.xlu0 %v2195_v55  ;;  %v3193_v55 = vld [vmem:[%s4574_s8 + $0x48] sm:$0xff] }
 0xd42   : > { %2215 = vrot.lane.b32.xlu0 %v4319_v19, %s4611_s27 }
 0xd86   : > { %v2176_v56 = vpop.xlane.xlu0 %2175 }
 0xd87   : > { %v2184_v57 = vsub.f32 %v2168_v38, %v2176_v56 }
 0xd89   : > { %v2189_v58 = vmul.f32 1.442695, %v2184_v57  ;;  %v3195_v57 = vld [vmem:[%s4574_s8 + $0x58] sm:$0xff] }
 0xd8a   : > { %v2179_v39 = vpop.xlane.xlu0 %2178 }
 0xd8b   : > { %3744 = vpow2.f32 %v2189_v58  ;;  %v2185_v59 = vsub.f32 %v2169_v44, %v2179_v39 }
 0xd8d   : > { %v2191_v60 = vmul.f32 1.442695, %v2185_v59 }
 0xd8e   : > { %v2182_v61 = vpop.xlane.xlu1 %2181 }
 0xd8f   : > { %3746 = vpow2.f32 %v2191_v60  ;;  %v2186_v62 = vsub.f32 %v2170_v49, %v2182_v61 }
 0xd91   : > { %v2193_v63 = vmul.f32 1.442695, %v2186_v62 }
 0xd92   : > { %v2292_v12 = vpop.permute.xlu1 %2291 }
 0xd93   : > { %3748 = vpow2.f32 %v2193_v63  ;;  %v3196_v63 = vld [vmem:[%s4574_s8 + $0x60] sm:$0xff] }
 0xd95   : > { %v3745_v0 = vpop.eup %3744 }
 0xd96   : > { %v2198_v1 = vsel %vm673_vm3, %v3745_v0, 0.0 }
 0xd97   : > { %2199 = vadd.xlane.f32.xlu1 %v2198_v1 }
 0xd99   : > { %v3747_v21 = vpop.eup %3746 }
 0xd9a   : > { %v2201_v3 = vsel %vm673_vm3, %v3747_v21, 0.0 }
 0xd9b   : > { %2202 = vadd.xlane.f32.xlu0 %v2201_v3  ;;  %v3199_v3 = vld [vmem:[%s4574_s8 + $0x78] sm:$0xff] }
 0xd9d   : > { %v3749_v6 = vpop.eup %3748 }
 0xd9e   : > { %v2204_v7 = vsel %vm673_vm3, %v3749_v6, 0.0 }
 0xd9f   : > { %2205 = vadd.xlane.f32.xlu1 %v2204_v7  ;;  %v3211_v7 = vld [vmem:[%s4576_s10 + $0x20] sm:$0xff] }
 0xdb0   : > { %2367 = vrot.lane.b32.xlu1 %v4329_v23, %s4611_s27 }
 0xdb1   : > { %2443 = vrot.lane.b32.xlu0 %v4334_v25, %s4611_s27  ;;  %s4613_s27 = smov 16  }
 0xdb9   : > { %v2197_v8 = vpop.xlane.xlu0 %2196 }
 0xdba   : > { %3750 = vrcp.f32 %v2197_v8  ;;  %v3212_v8 = vld [vmem:[%s4576_s10 + $0x28] sm:$0xff] }
 0xdbd   : > { %v2216_v9 = vpop.permute.xlu0 %2215 }
 0xdbe   : > { %3489 = vmatpush3.msra.mxu0 %v2216_v9  ;;  %v3661_v9 = vpack.c.bf16 %v3212_v8, %v3211_v7 }
 0xdbf   : > { %3493 = vmatprep.subr.mxu0 %v3828_v5 }
 0xdc4   : > { %v3751_v10 = vpop.eup %3750 }
 0xdc5   : > { %v2211_v11 = vmul.f32 %v3751_v10, %v3743_v54  ;;  %v3192_v54 = vld [vmem:[%s4574_s8 + $0x40] sm:$0xff]  ;;  %v3213_v10 = vld [vmem:[%s4576_s10 + $0x30] sm:$0xff] }
 0xdc6   : > { %v3645_v56 = vpack.c.bf16 %v3193_v55, %v3192_v54 }
 0xdc7   : > { %3491 = vmatmul.mubr.msk.f32.vlgmr.msra.gmra.mrb[10].mxu0 %vm673_vm3, %v2211_v11  ;;  %v3214_v11 = vld [vmem:[%s4576_s10 + $0x38] sm:$0xff] }
 0xdc8   : > { %3494 = vmatpush3.msra.mxu0 %v2292_v12  ;;  %3495 = vmatprep.mubr.msk.f32.mxu0 %vm3827_vm2, %v3828_v5  ;;  %v3665_v12 = vpack.c.bf16 %v3214_v11, %v3213_v10 }
 0xdc9   : > { %3498 = vmatprep.subr.mxu0 %v3828_v5  ;;  %3647 = vmatpush3.bf16.xpose.msk.msra.mxu1 %vm3980_vm1, %v3645_v56 }
 0xdca   : > { %3648 = vmatprep.subr.bf16.mxu1 %v3826_v2 }
 0xe24   : > { %v2200_v13 = vpop.xlane.xlu1 %2199 }
 0xe25   : > { %3752 = vrcp.f32 %v2200_v13 }
 0xe28   : > { %v2203_v14 = vpop.xlane.xlu0 %2202 }
 0xe29   : > { %3754 = vrcp.f32 %v2203_v14 }
 0xe2c   : > { %v2206_v15 = vpop.xlane.xlu1 %2205  ;;  %v2444_v24 = vpop.permute.xlu0 %2443 }
 0xe2d   : > { %3756 = vrcp.f32 %v2206_v15 }
 0xe2f   : > { %v3753_v17 = vpop.eup %3752 }
 0xe30   : > { %v2212_v18 = vmul.f32 %v3753_v17, %v3745_v0  ;;  %v2368_v19 = vpop.permute.xlu1 %2367  ;;  %v3197_v0 = vld [vmem:[%s4574_s8 + $0x68] sm:$0xff] }
 0xe31   : > { %v3653_v1 = vpack.c.bf16 %v3197_v0, %v3196_v63 }
 0xe32   : > { %3496 = vmatmul.mubr.msk.f32.vlgmr.msra.gmra.mrb[12].mxu0 %vm673_vm3, %v2212_v18  ;;  %v3190_v18 = vld [vmem:[%s4572_s6 + $0x1] ss:$0 sm:$0xff] }
 0xe33   : > { %v3755_v20 = vpop.eup %3754  ;;  %3499 = vmatpush3.msra.mxu0 %v2368_v19  ;;  %3500 = vmatprep.mubr.msk.f32.mxu0 %vm3827_vm2, %v3828_v5 }
 0xe34   : > { %v2213_v23 = vmul.f32 %v3755_v20, %v3747_v21  ;;  %3503 = vmatprep.subr.mxu0 %v3828_v5  ;;  %v3198_v21 = vld [vmem:[%s4574_s8 + $0x70] sm:$0xff]  ;;  %v3191_v20 = vld [vmem:[%s4573_s7 + $0x1] ss:$0 sm:$0xff] }
 0xe36   : > { %3501 = vmatmul.mubr.msk.f32.vlgmr.msra.gmra.mrb[14].mxu0 %vm673_vm3, %v2213_v23 }
 0xe37   : > { %v3757_v25 = vpop.eup %3756  ;;  %3504 = vmatpush3.msra.mxu0 %v2444_v24  ;;  %3505 = vmatprep.mubr.msk.f32.mxu0 %vm3827_vm2, %v3828_v5 }
 0xe38   : > { %v2214_v26 = vmul.f32 %v3757_v25, %v3749_v6  ;;  %3636 = vmatprep.subr.bf16.mxu0 %v3826_v2  ;;  %v3657_v6 = vpack.c.bf16 %v3199_v3, %v3198_v21 }
 0xe3a   : > { %3506 = vmatmul.mubr.msk.f32.vlgmr.msra.gmra.mrb[16].mxu0 %vm673_vm3, %v2214_v26 }
 0xe3b   : > { %3516 = vmatprep.mubr.msk.f32.mxu0 %vm3827_vm2, %v3828_v5 }
 0xe3e   : > { %3639 = vmatpush3.bf16.xpose.msk.msra.mxu0 %vm3980_vm1, %v3637_v29 }
 0xe3f   : > { %3640 = vmatprep.subr.bf16.mxu0 %v3826_v2 }
 0xe46   : > { %3643 = vmatpush3.bf16.xpose.msk.msra.mxu0 %vm3980_vm1, %v3641_v34 }
 0xe47   : > { %3660 = vmatprep.subr.bf16.mxu0 %v3826_v2 }
 0xe9a   : > { %v2287_v30 = vpop.f32.mrb[10].mxu0 }
 0xe9b   : > { %v3492_v31 = vpop.f32.mrb[11].mxu0 }
 0xf05   : > { %v2363_v35 = vpop.f32.mrb[12].mxu0 }
 0xf06   : > { %2520 = vrot.lane.b32.xlu1 %v2363_v35, %s4612_s17  ;;  %v3497_v36 = vpop.f32.mrb[13].mxu0  ;;  %s523_s17 = scalar_lea.vmem [#allocation2], %s3084_s28  ;;  %s3766_s28 = sshll.u32 %s3837_s25, 4  ;;  %s3767_s28 = int_to_ptr.vmem [resolvable:$false] %s3766_s28 }
 0xf07   : > { %s3768_s1 = scalar_lea.vmem %s3767_s28, 256 }
 0xf09   : > { %v2439_v37 = vpop.f32.mrb[14].mxu0 }
 0xf0a   : > { %2524 = vrot.lane.b32.xlu0 %v2439_v37, %s4613_s27  ;;  %v3502_v38 = vpop.f32.mrb[15].mxu0  ;;  %s3012_s27 = sshll.u32 %s523_s17, 4  ;;  %s4525_s27 = int_to_ptr.vmem [resolvable:$true] %s3012_s27 }
 0xf0b   : > { %s3762_s26 = scalar_lea.vmem %s4525_s27, 128  ;;  %p3769_p0 = scmp.lt.s32.totalorder %s4525_s27, %s3767_s28 }
 0xf0c   : > { %p3763_p11 = scmp.ne.s32.totalorder %s4525_s27, %s3762_s26  ;;  %p3770_p1 = scmp.lt.s32.totalorder %s3768_s1, %s3762_s26 }
 0xf0d   : > { %v2515_v40 = vpop.f32.mrb[16].mxu0 }
 0xf0e   : > { %2528 = vrot.lane.b32.xlu1 %v2515_v40, %s4614_s19  ;;  %v3507_v41 = vpop.f32.mrb[17].mxu0  ;;  %v2910_v40 = vld [vmem:[%s4580_s14 + $0x8] sm:$0xff]  ;;  %p3764_p12 = pnand %p3763_p11, %p3961_p5  ;;  %p3771_p2 = por %p3770_p1, %p3769_p0 }
 0xf10   : > { %p3765_p13 = pneg %p3764_p12 }
 0xf12   : > { %p3772_p3 = pnand %p3771_p2, %p3765_p13 }
 0xf78   : > { %v2521_v42 = vpop.permute.xlu1 %2520 }
 0xf79   : > { %v2531_v44 = vsel %vm673_vm3, %v2287_v30, %v2521_v42 }
 0xf7c   : > { %v2525_v43 = vpop.permute.xlu0 %2524 }
 0xf7d   : > { %v2532_v45 = vsel %vm1351_vm4, %v2531_v44, %v2525_v43 }
 0xf80   : > { %v2529_v46 = vpop.permute.xlu1 %2528 }
 0xf81   : > { %v2533_v47 = vsel %vm1353_vm5, %v2532_v45, %v2529_v46  ;;  %v3224_v46 = vld [vmem:[%s4578_s12 + $0x1] ss:$0 sm:$0xff] }
 0xf82   : > { %3517 = vmatmul.mubr.msk.f32.vlgmr.msra.gmra.mrb[18].mxu0 %vm554_vm0, %v2533_v47 }
 0xf83   : > { %3546 = vmatprep.mubr.msk.f32.mxu0 %vm3827_vm2, %v3828_v5  ;;  %3663 = vmatpush3.bf16.xpose.msk.msra.mxu0 %vm4214_vm7, %v3661_v9 }
 0xf84   : > { %3664 = vmatprep.subr.bf16.mxu0 %v3826_v2 }
 0xf8b   : > { %3667 = vmatpush3.bf16.xpose.msk.msra.mxu0 %vm4214_vm7, %v3665_v12 }
 0xf8c   : > { %3668 = vmatprep.subr.bf16.mxu0 %v3826_v2 }
0x1055   : > { %v2628_v49 = vpop.f32.mrb[18].mxu0 }
0x1056   : > { %v2629_v50 = vadd.f32 %v3182_v48, %v2628_v49  ;;  %v3518_v51 = vpop.f32.mrb[19].mxu0  ;;  %v3225_v48 = vld [vmem:[%s4579_s13 + $0x1] ss:$0 sm:$0xff] }
0x1058   : > { %v2632_v52 = vadd.f32 %v2629_v50, %v4310_v16  ;;  %v3194_v16 = vld [vmem:[%s4574_s8 + $0x50] sm:$0xff] }
0x1059   : > { %v3649_v58 = vpack.c.bf16 %v3195_v57, %v3194_v16 }
0x105a   : > { %v2637_v53 = vsel %vm554_vm0, %v2632_v52, 0.0 }
0x105b   : > { %2638 = vadd.xlane.f32.xlu0 %v2637_v53  ;;  %3651 = vmatpush3.bf16.xpose.msk.msra.mxu1 %vm3980_vm1, %v3649_v58 }
0x105c   : > { %3652 = vmatprep.subr.bf16.mxu1 %v3826_v2 }
0x1063   : > { %3655 = vmatpush3.bf16.xpose.msk.msra.mxu1 %vm3980_vm1, %v3653_v1 }
0x1064   : > { %3656 = vmatprep.subr.bf16.mxu1 %v3826_v2  ;;  %v3201_v2 = vld [vmem:[%s4575_s9 + $0x1] ss:$0 sm:$0xff] }
0x106b   : > { %3659 = vmatpush3.bf16.xpose.msk.msra.mxu1 %vm3980_vm1, %v3657_v6 }
0x10e8   : > { %v2639_v39 = vpop.xlane.xlu0 %2638 }
0x10e9   : > { %v2640_v59 = vmul.f32 0.03125, %v2639_v39 }
0x10eb   : > { %v2641_v60 = vsub.f32 %v2632_v52, %v2640_v59 }
0x10ed   : > { %v2642_v61 = vmul.f32 %v2641_v60, %v2641_v60 }
0x10ef   : > { %v2643_v62 = vsel %vm554_vm0, %v2642_v61, 0.0 }
0x10f0   : > { %2644 = vadd.xlane.f32.xlu1 %v2643_v62 }
0x117d   : > { %v2645_v13 = vpop.xlane.xlu1 %2644 }
0x117e   : > { %v2646_v14 = vmul.f32 0.03125, %v2645_v13 }
0x1180   : > { %v2647_v15 = vadd.f32 1e-05, %v2646_v14 }
0x1182   : > { %3758 = vrsqrt.f32 %v2647_v15 }
0x118c   : > { %v3759_v17 = vpop.eup %3758 }
0x118d   : > { %v2649_v19 = vmul.f32 %v3759_v17, %v2641_v60 }
0x118f   : > { %v2656_v23 = vmul.f32 %v3190_v18, %v2649_v19 }
0x1191   : > { %v2663_v24 = vadd.f32 %v3191_v20, %v2656_v23 }
0x1193   : > { %3536 = vmatmul.mubr.msk.f32.vlgmr.msra.gmra.mrb[24].mxu1 %vm554_vm0, %v2663_v24 }
0x1266   : > { %v2774_v22 = vpop.f32.mrb[24].mxu1 }
0x1267   : > { %v2775_v25 = vadd.f32 %v3201_v2, %v2774_v22  ;;  %v3537_v26 = vpop.f32.mrb[25].mxu1 }
0x1269   : > { %v2778_v27 = vmax.f32 %v2775_v25, 0.0 }
0x126b   : > { %3547 = vmatmul.mubr.msk.f32.vlgmr.msra.gmra.mrb[20].mxu0 %vm1606_vm6, %v2778_v27 }
0x126c   : > { %3553 = vmatprep.mubr.msk.f32.mxu0 %vm3827_vm2, %v3828_v5  ;;  %v2909_v5 = vld [vmem:[%s4580_s14] sm:$0xff] }
0x126d   : > { %v3669_v41 = vpack.c.bf16 %v2910_v40, %v2909_v5 }
0x126f   : > { %3671 = vmatpush3.bf16.xpose.msk.msra.mxu0 %vm3980_vm1, %v3669_v41 }
0x133e   : > { %v2873_v29 = vpop.f32.mrb[20].mxu0 }
0x133f   : > { %v2874_v30 = vadd.f32 %v3216_v28, %v2873_v29  ;;  %v3548_v31 = vpop.f32.mrb[21].mxu0 }
0x1341   : > { %v2877_v32 = vadd.f32 %v2874_v30, %v2663_v24 }
0x1343   : > { %v2882_v33 = vsel %vm554_vm0, %v2877_v32, 0.0 }
0x1344   : > { %2883 = vadd.xlane.f32.xlu0 %v2882_v33 }
0x13d1   : > { %v2884_v34 = vpop.xlane.xlu0 %2883 }
0x13d2   : > { %v2885_v35 = vmul.f32 0.03125, %v2884_v34 }
0x13d4   : > { %v2886_v36 = vsub.f32 %v2877_v32, %v2885_v35 }
0x13d6   : > { %v2887_v37 = vmul.f32 %v2886_v36, %v2886_v36 }
0x13d8   : > { %v2888_v38 = vsel %vm554_vm0, %v2887_v37, 0.0 }
0x13d9   : > { %2889 = vadd.xlane.f32.xlu0 %v2888_v38 }
0x1466   : > { %v2890_v42 = vpop.xlane.xlu0 %2889 }
0x1467   : > { %v2891_v43 = vmul.f32 0.03125, %v2890_v42 }
0x1469   : > { %v2892_v44 = vadd.f32 1e-05, %v2891_v43 }
0x146b   : > { %3760 = vrsqrt.f32 %v2892_v44 }
0x1475   : > { %v3761_v45 = vpop.eup %3760 }
0x1476   : > { %v2894_v47 = vmul.f32 %v3761_v45, %v2886_v36 }
0x1478   : > { %v2901_v49 = vmul.f32 %v3224_v46, %v2894_v47 }
0x147a   : > { %v2908_v50 = vadd.f32 %v3225_v48, %v2901_v49 }
0x147c   : > { %3554 = vmatmul.mubr.msk.f32.vlgmr.msra.gmra.mrb[22].mxu0 %vm554_vm0, %v2908_v50 }
0x154f   : > { %v2993_v51 = vpop.f32.mrb[22].mxu0 }
0x1550   : > { %v2994_v52 = vadd.f32 %v3226_v4, %v2993_v51  ;;  %v3555_v53 = vpop.f32.mrb[23].mxu0 }
0x1552   : > { %2997 = vst.msk [vmem:[%s523_s17] sm:$0xff] %vm1351_vm4, %v2994_v52 }
0x1553   : > { %3775 = shalt.err (!%p3772_p3)
}
0x1554   : > { %s3776_s20 = scalar_lea.hbm %s4523_s30, 128  ;;  %s3780_s19 = scalar_lea.hbm %s4582_s16, 256 }
0x1555   : > { %p3777_p4 = scmp.ne.s32.totalorder %s4523_s30, %s3776_s20  ;;  %p3781_p9 = scmp.lt.u32.totalorder %s4523_s30, %s4582_s16 }
0x1556   : > { %p3782_p10 = scmp.lt.u32.totalorder %s3780_s19, %s3776_s20  ;;  %p3784_p12 = scmp.lt.u32.totalorder %s3776_s20, %s4523_s30 }
0x1557   : > { %p3778_p7 = pnand %p3777_p4, %p3961_p5 }
0x1558   : > { %p3783_p11 = por %p3782_p10, %p3781_p9 }
0x1559   : > { %p3779_p8 = pneg %p3778_p7 }
0x155a   : > { %p3785_p13 = por %p3784_p12, %p3783_p11 }
0x155c   : > { %p3786_p0 = pnand %p3785_p13, %p3779_p8 }
0x155e   : > { %3789 = shalt.err (!%p3786_p0)
}
0x155f   : > { %3672 = dma.vmem_to_hbm [thread:$0]  (%p3961_p5), %s4525_s27, 128, %s4523_s30, %s2999_s29  }
0x1560 PF: > { %p3678_p1 = scmp.ge.s32.totalorder %s3824_s24, 2  ;;  %s3024_s26 = sand.u32 1, %s3812_s21  }
0x1561   : > { %s3025_s28 = scalar_lea.sflag [#allocation3], %s3024_s26 }
0x1562   : > { %p3675_p2 = pnand %p3678_p1, %p3965_p6 }
0x1564   : > { %3807 = dma.done.wait (!%p3675_p2), %s3025_s28, 128  }
0x1565   : > { %3809 = vsyncadd (!%p3675_p2), %s3025_s28, 4294967168  ;;  %s4616_s24 = sld [smem:[#allocation6_spill]]  ;;  %s4617_s20 = sld [smem:[#allocation5_spill]] }
0x1566   : > { %s4618_s23 = sld [smem:[#allocation7_spill]]  ;;  %s4619_s21 = smov %s3816_s22 }
0x156b   : > { %p26_p3 = scmp.ge.s32.totalorder %s4616_s24, 4   ;;  %s4620_s22 = smov %s4617_s20 }
0x156d   :  { %28 = sbr.rel (!%p26_p3) target bundleno = 6 (0x6), region = 134 }
0x1574   :  { %3030 = vsyncpa [#allocation3], 1 }
0x1575   :  { %3032 = vsyncpa [#allocation3 + $0x1], 1 }

</bundles_post_ra>
